<compile_context>
chip_gen: v5e
topology: v5e:2x2
jax: 0.10.0
libtpu: 0.0.40
codegen_flags: <defaults>
</compile_context>

<pallas_src>
import functools
import math

import jax
import jax.numpy as jnp
from jax.experimental import pallas as pl
from jax.experimental.pallas import tpu as pltpu

# ---- small synthetic BERT config ----
VOCAB = 100
HIDDEN = 128          # stands in for 768 of bert-base
LAYERS = 2
HEADS = 2
HEAD_DIM = HIDDEN // HEADS
INTERMEDIATE = 256
MAX_POS = 32
NUM_CLASSES = 2
CLS_PAD = 128         # lane-dense padded width for the classifier output
EPS = 1e-12
VEC_W = 3 * HIDDEN    # width of the packed per-layer bias/LN vector table


# --------------------------- in-kernel helpers ------------------------------

def _layernorm(x, g, b):
    mu = jnp.mean(x, axis=-1, keepdims=True)
    var = jnp.mean(jnp.square(x - mu), axis=-1, keepdims=True)
    return (x - mu) * jax.lax.rsqrt(var + EPS) * g + b


def _bf16_dot(x, w_bf16, bias_f32):
    # bf16 MXU operands, f32 accumulation, f32 bias add
    return jnp.dot(x.astype(jnp.bfloat16), w_bf16,
                   preferred_element_type=jnp.float32) + bias_f32


# --------------- fused encoder + pooler + classifier kernel -----------------
# grid = (batch, layers); one sequence per batch grid step, layers carried in
# a VMEM scratch.  Head (pooler+fc+softmax) runs on the last layer step.

def _encoder_kernel(x_ref, mask_ref, emb_ln_ref,
                    wqkv_ref, wo_ref, w1_ref, w2_ref, vec_ref,
                    pool_w_ref, fc_w_ref, head_vec_ref,
                    probs_ref, h_ref, ctx_ref):
    layer = pl.program_id(1)

    @pl.when(layer == 0)
    def _():
        # embedding layernorm (residual-free) seeds the VMEM-resident carry
        h_ref[...] = _layernorm(x_ref[...], emb_ln_ref[0:1, :],
                                emb_ln_ref[1:2, :])

    h = h_ref[...]                                  # [S, H] f32

    # ---- one coalesced per-layer vector table: slice rows in-kernel ----
    vecs = vec_ref[0]                               # [8, 3H] f32
    bqkv = vecs[0:1, :]
    bo = vecs[1:2, :HIDDEN]
    ln1_g = vecs[2:3, :HIDDEN]
    ln1_b = vecs[3:4, :HIDDEN]
    b1 = vecs[4:5, :INTERMEDIATE]
    b2 = vecs[5:6, :HIDDEN]
    ln2_g = vecs[6:7, :HIDDEN]
    ln2_b = vecs[7:8, :HIDDEN]

    # ---- fused QKV projection: one MXU pass with N = 3*HIDDEN ----
    qkv = _bf16_dot(h, wqkv_ref[0], bqkv)           # [S, 3H] f32

    # ---- multi-head self-attention (this sequence only) ----
    mask = mask_ref[0]                              # [1, S] additive
    scale = 1.0 / math.sqrt(HEAD_DIM)
    for hd in range(HEADS):                         # tiny static unroll (HEADS=2)
        c0 = hd * HEAD_DIM
        q = qkv[:, c0:c0 + HEAD_DIM].astype(jnp.bfloat16)
        k = qkv[:, HIDDEN + c0:HIDDEN + c0 + HEAD_DIM].astype(jnp.bfloat16)
        v = qkv[:, 2 * HIDDEN + c0:2 * HIDDEN + c0 + HEAD_DIM].astype(jnp.bfloat16)
        # q @ k^T without an explicit transpose; bf16 operands, f32 accumulate
        s = jax.lax.dot_general(q, k, (((1,), (1,)), ((), ())),
                                preferred_element_type=jnp.float32)
        s = s * scale + mask
        s = s - jnp.max(s, axis=-1, keepdims=True)
        p = jnp.exp(s)
        p = p * pl.reciprocal(jnp.sum(p, axis=-1, keepdims=True), approx=True)
        # write this head's context straight into the ctx scratch slice
        ctx_ref[:, c0:c0 + HEAD_DIM] = jnp.dot(
            p.astype(jnp.bfloat16), v, preferred_element_type=jnp.float32)
    ctx = ctx_ref[...]                              # [S, H]

    # ---- attention output projection + add & norm ----
    attn_out = _bf16_dot(ctx, wo_ref[0], bo)
    h1 = _layernorm(attn_out + h, ln1_g, ln1_b)

    # ---- feed-forward + add & norm ----
    # TODO(synk): bert-base uses exact erf-gelu; tanh approximation used here.
    ffn = jax.nn.gelu(_bf16_dot(h1, w1_ref[0], b1), approximate=True)
    ffn = _bf16_dot(ffn, w2_ref[0], b2)
    h2 = _layernorm(ffn + h1, ln2_g, ln2_b)

    h_ref[...] = h2                                 # carry for next layer

    # ---- fused head on the last layer step: pooler + dropout(id) + fc + softmax
    @pl.when(layer == pl.num_programs(1) - 1)
    def _():
        cls = h2[0:1, :]                            # CLS hidden state, [1, H]
        pooled = jnp.tanh(
            jnp.dot(cls.astype(jnp.bfloat16), pool_w_ref[...],
                    preferred_element_type=jnp.float32)
            + head_vec_ref[0:1, :])                 # bert(...)[1]
        # nn.Dropout(0.2): inference mode -> identity
        logits = (jnp.dot(pooled.astype(jnp.bfloat16), fc_w_ref[...],
                          preferred_element_type=jnp.float32)
                  + head_vec_ref[1:2, :])           # padded lanes biased -1e30
        logits = logits - jnp.max(logits, axis=-1, keepdims=True)
        e = jnp.exp(logits)
        # EXACT divide for nn.Softmax(dim=1) (approx reciprocal broke sum-to-1)
        probs_ref[0] = e / jnp.sum(e, axis=-1, keepdims=True)


def encoder_and_head(params, x_emb, mask_add, batch, seq):
    per_layer = lambda b, l: (l, 0, 0)
    const2 = lambda b, l: (0, 0)
    in_specs = [
        pl.BlockSpec((seq, HIDDEN), lambda b, l: (b, 0)),        # x_emb (per batch)
        pl.BlockSpec((1, 1, seq), lambda b, l: (b, 0, 0)),       # additive mask
        pl.BlockSpec((2, HIDDEN), const2),                       # emb LN g|b
        pl.BlockSpec((1, HIDDEN, 3 * HIDDEN), per_layer),        # wqkv (bf16)
        pl.BlockSpec((1, HIDDEN, HIDDEN), per_layer),            # wo   (bf16)
        pl.BlockSpec((1, HIDDEN, INTERMEDIATE), per_layer),      # w1   (bf16)
        pl.BlockSpec((1, INTERMEDIATE, HIDDEN), per_layer),      # w2   (bf16)
        pl.BlockSpec((1, 8, VEC_W), per_layer),                  # packed biases/LN
        pl.BlockSpec((HIDDEN, HIDDEN), const2),                  # pool_w (bf16)
        pl.BlockSpec((HIDDEN, CLS_PAD), const2),                 # fc_w padded (bf16)
        pl.BlockSpec((2, CLS_PAD), const2),                      # pool_b | fc_b_pad
    ]
    # TODO(synk): for real BERT-base shapes, alias/refetch x_emb only at layer 0
    # and re-budget VMEM (bf16 carry, vmem_limit_bytes) for v7x's 64 MiB.
    return pl.pallas_call(
        _encoder_kernel,
        out_shape=jax.ShapeDtypeStruct((batch, 1, CLS_PAD), jnp.float32),
        grid=(batch, LAYERS),
        in_specs=in_specs,
        out_specs=pl.BlockSpec((1, 1, CLS_PAD), lambda b, l: (b, 0, 0)),
        scratch_shapes=[pltpu.VMEM((seq, HIDDEN), jnp.float32),   # layer carry
                        pltpu.VMEM((seq, HIDDEN), jnp.float32)],  # attn context
        compiler_params=pltpu.CompilerParams(
            dimension_semantics=("parallel", "arbitrary")),
    )(x_emb, mask_add, params["emb_ln"],
      params["wqkv"], params["wo"], params["w1"], params["w2"],
      params["layer_vecs"], params["pool_w"], params["fc_w_pad"],
      params["head_vecs"])


# --------------------------- parameter construction ------------------------

def init_params(key):
    def nrm(k, shape):
        return 0.02 * jax.random.normal(k, shape, dtype=jnp.float32)

    keys = iter(jax.random.split(key, 4 * LAYERS + 8))
    wqkv, wo, w1, w2 = [], [], [], []
    for _ in range(LAYERS):
        wqkv.append(nrm(next(keys), (HIDDEN, 3 * HIDDEN)))       # merged Q|K|V
        wo.append(nrm(next(keys), (HIDDEN, HIDDEN)))
        w1.append(nrm(next(keys), (HIDDEN, INTERMEDIATE)))
        w2.append(nrm(next(keys), (INTERMEDIATE, HIDDEN)))

    def pad_row(v):
        return jnp.concatenate(
            [v, jnp.zeros((VEC_W - v.shape[0],), jnp.float32)])

    # packed per-layer vector table: one DMA per layer instead of ~10 tiny ones
    layer_vec = jnp.stack([
        jnp.zeros((VEC_W,), jnp.float32),          # row 0: bqkv
        pad_row(jnp.zeros((HIDDEN,))),             # row 1: bo
        pad_row(jnp.ones((HIDDEN,))),              # row 2: ln1_g
        pad_row(jnp.zeros((HIDDEN,))),             # row 3: ln1_b
        pad_row(jnp.zeros((INTERMEDIATE,))),       # row 4: b1
        pad_row(jnp.zeros((HIDDEN,))),             # row 5: b2
        pad_row(jnp.ones((HIDDEN,))),              # row 6: ln2_g
        pad_row(jnp.zeros((HIDDEN,))),             # row 7: ln2_b
    ])
    layer_vecs = jnp.tile(layer_vec[None], (LAYERS, 1, 1))       # (L, 8, 3H)

    fc_w = nrm(next(keys), (HIDDEN, NUM_CLASSES))                # nn.Linear(768, 2)
    fc_w_pad = jnp.zeros((HIDDEN, CLS_PAD), jnp.float32)
    fc_w_pad = fc_w_pad.at[:, :NUM_CLASSES].set(fc_w)

    pool_b = jnp.zeros((HIDDEN,), jnp.float32)
    fc_b_pad = jnp.full((CLS_PAD,), -1e30, jnp.float32)          # pads vanish in softmax
    fc_b_pad = fc_b_pad.at[:NUM_CLASSES].set(0.0)

    params = {
        "word_emb": nrm(next(keys), (VOCAB, HIDDEN)),
        "pos_emb": nrm(next(keys), (MAX_POS, HIDDEN)),
        "type_emb": nrm(next(keys), (2, HIDDEN)),
        "emb_ln": jnp.stack([jnp.ones((HIDDEN,), jnp.float32),
                             jnp.zeros((HIDDEN,), jnp.float32)]),
        # MXU operands in bf16; biases / LN params / statistics stay f32.
        "wqkv": jnp.stack(wqkv).astype(jnp.bfloat16),
        "wo": jnp.stack(wo).astype(jnp.bfloat16),
        "w1": jnp.stack(w1).astype(jnp.bfloat16),
        "w2": jnp.stack(w2).astype(jnp.bfloat16),
        "layer_vecs": layer_vecs,
        "pool_w": nrm(next(keys), (HIDDEN, HIDDEN)).astype(jnp.bfloat16),
        "fc_w_pad": fc_w_pad.astype(jnp.bfloat16),
        "head_vecs": jnp.stack([pool_b, fc_b_pad]),              # (2, 128)
    }
    return params


# ------------------------------- forward pass -------------------------------

def bert_arch_forward(params, sent_id, mask):
    B, S = sent_id.shape

    # embeddings (token gather is glue in plain JAX)
    h = (params["word_emb"][sent_id]
         + params["pos_emb"][:S][None, :, :]
         + params["type_emb"][0][None, None, :])
    x_emb = h.reshape(B * S, HIDDEN)

    # HF-style additive attention mask, shape (B, 1, S)
    mask_add = ((1.0 - mask.astype(jnp.float32)) * -1e9).reshape(B, 1, S)

    # embeddings-LN + all transformer layers + pooler + fc + softmax:
    # ONE pallas_call, lane-dense padded probability output
    probs_pad = encoder_and_head(params, x_emb, mask_add, B, S)  # (B, 1, 128)
    return probs_pad[:, 0, :NUM_CLASSES]


if __name__ == "__main__":
    key = jax.random.PRNGKey(0)
    pkey, ikey = jax.random.split(key)
    params = init_params(pkey)

    B, S = 2, 8
    sent_id = jax.random.randint(ikey, (B, S), 0, VOCAB, dtype=jnp.int32)
    mask = jnp.array([[1, 1, 1, 1, 1, 1, 1, 1],
                      [1, 1, 1, 1, 1, 1, 0, 0]], dtype=jnp.int32)

    out = jax.jit(bert_arch_forward)(params, sent_id, mask)
    out = jax.block_until_ready(out)
    assert out.shape == (B, NUM_CLASSES)
    assert bool(jnp.all(jnp.isfinite(out)))
    # softmax rows sum to 1 (exact divide in the head softmax)
    assert bool(jnp.all(jnp.abs(jnp.sum(out, axis=1) - 1.0) < 1e-3))
    print("KERNEL_OK")
</pallas_src>

<mosaic_0001>
module attributes {stable_mosaic.version = 11 : i64} {
  func.func @_encoder_kernel(%arg0: i32, %arg1: i32, %arg2: memref<8x128xf32, #tpu.memory_space<vmem>>, %arg3: memref<1x1x8xf32, #tpu.memory_space<vmem>>, %arg4: memref<2x128xf32, #tpu.memory_space<vmem>>, %arg5: memref<1x128x384xbf16, #tpu.memory_space<vmem>>, %arg6: memref<1x128x128xbf16, #tpu.memory_space<vmem>>, %arg7: memref<1x128x256xbf16, #tpu.memory_space<vmem>>, %arg8: memref<1x256x128xbf16, #tpu.memory_space<vmem>>, %arg9: memref<1x8x384xf32, #tpu.memory_space<vmem>>, %arg10: memref<128x128xbf16, #tpu.memory_space<vmem>>, %arg11: memref<128x128xbf16, #tpu.memory_space<vmem>>, %arg12: memref<2x128xf32, #tpu.memory_space<vmem>>, %arg13: memref<1x1x128xf32, #tpu.memory_space<vmem>>, %arg14: memref<8x128xf32, #tpu.memory_space<vmem>>, %arg15: memref<8x128xf32, #tpu.memory_space<vmem>>) attributes {dimension_semantics = [#tpu.dimension_semantics<parallel>, #tpu.dimension_semantics<arbitrary>], iteration_bounds = array<i64: 2, 2>, scalar_prefetch = 0 : i64, scratch_operands = 2 : i64, tpu.core_type = #tpu.core_type<tc>, window_params = [{transform_indices = @transform_0, window_bounds = array<i64: 8, 128>}, {transform_indices = @transform_1, window_bounds = array<i64: 1, 1, 8>}, {pipeline_mode = #tpu.pipeline_mode<synchronous>, transform_indices = @transform_2, window_bounds = array<i64: 2, 128>}, {transform_indices = @transform_3, window_bounds = array<i64: 1, 128, 384>}, {transform_indices = @transform_4, window_bounds = array<i64: 1, 128, 128>}, {transform_indices = @transform_5, window_bounds = array<i64: 1, 128, 256>}, {transform_indices = @transform_6, window_bounds = array<i64: 1, 256, 128>}, {transform_indices = @transform_7, window_bounds = array<i64: 1, 8, 384>}, {pipeline_mode = #tpu.pipeline_mode<synchronous>, transform_indices = @transform_8, window_bounds = array<i64: 128, 128>}, {pipeline_mode = #tpu.pipeline_mode<synchronous>, transform_indices = @transform_9, window_bounds = array<i64: 128, 128>}, {pipeline_mode = #tpu.pipeline_mode<synchronous>, transform_indices = @transform_10, window_bounds = array<i64: 2, 128>}, {transform_indices = @transform_11, window_bounds = array<i64: 1, 1, 128>}]} {
    %c0_i32 = arith.constant 0 : i32
    %0 = arith.cmpi eq, %arg1, %c0_i32 : i32
    %1 = arith.extui %0 : i1 to i32
    %c0_i32_0 = arith.constant 0 : i32
    %2 = arith.cmpi ne, %1, %c0_i32_0 : i32
    scf.if %2 {
      %c0_55 = arith.constant 0 : index
      %c0_56 = arith.constant 0 : index
      %152 = vector.load %arg2[%c0_55, %c0_56] : memref<8x128xf32, #tpu.memory_space<vmem>>, vector<8x128xf32>
      %c0_57 = arith.constant 0 : index
      %c0_58 = arith.constant 0 : index
      %153 = vector.load %arg4[%c0_57, %c0_58] : memref<2x128xf32, #tpu.memory_space<vmem>>, vector<1x128xf32>
      %c1 = arith.constant 1 : index
      %c0_59 = arith.constant 0 : index
      %154 = vector.load %arg4[%c1, %c0_59] : memref<2x128xf32, #tpu.memory_space<vmem>>, vector<1x128xf32>
      %cst_60 = arith.constant dense<0.000000e+00> : vector<8xf32>
      %155 = vector.multi_reduction <add>, %152, %cst_60 [1] : vector<8x128xf32> to vector<8xf32>
      %156 = vector.shape_cast %155 : vector<8xf32> to vector<8x1xf32>
      %cst_61 = arith.constant 1.280000e+02 : f32
      %157 = vector.broadcast %cst_61 : f32 to vector<8x1xf32>
      %158 = arith.divf %156, %157 : vector<8x1xf32>
      %159 = vector.broadcast %158 : vector<8x1xf32> to vector<8x128xf32>
      %160 = arith.subf %152, %159 : vector<8x128xf32>
      %161 = arith.mulf %160, %160 : vector<8x128xf32>
      %cst_62 = arith.constant dense<0.000000e+00> : vector<8xf32>
      %162 = vector.multi_reduction <add>, %161, %cst_62 [1] : vector<8x128xf32> to vector<8xf32>
      %163 = vector.shape_cast %162 : vector<8xf32> to vector<8x1xf32>
      %cst_63 = arith.constant 1.280000e+02 : f32
      %164 = vector.broadcast %cst_63 : f32 to vector<8x1xf32>
      %165 = arith.divf %163, %164 : vector<8x1xf32>
      %166 = vector.broadcast %158 : vector<8x1xf32> to vector<8x128xf32>
      %167 = arith.subf %152, %166 : vector<8x128xf32>
      %cst_64 = arith.constant 9.99999996E-13 : f32
      %168 = vector.broadcast %cst_64 : f32 to vector<8x1xf32>
      %169 = arith.addf %165, %168 : vector<8x1xf32>
      %170 = math.rsqrt %169 : vector<8x1xf32>
      %171 = vector.broadcast %170 : vector<8x1xf32> to vector<8x128xf32>
      %172 = arith.mulf %167, %171 : vector<8x128xf32>
      %173 = vector.broadcast %153 : vector<1x128xf32> to vector<8x128xf32>
      %174 = arith.mulf %172, %173 : vector<8x128xf32>
      %175 = vector.broadcast %154 : vector<1x128xf32> to vector<8x128xf32>
      %176 = arith.addf %174, %175 : vector<8x128xf32>
      %c0_65 = arith.constant 0 : index
      %c0_66 = arith.constant 0 : index
      %177 = vector.load %arg14[%c0_65, %c0_66] : memref<8x128xf32, #tpu.memory_space<vmem>>, vector<8x128xf32>
      tpu.vector_store %arg14[%c0_65, %c0_66], %176 {strides = array<i32>} : memref<8x128xf32, #tpu.memory_space<vmem>>, vector<8x128xf32>,
    } else {
    }
    %c0 = arith.constant 0 : index
    %c0_1 = arith.constant 0 : index
    %3 = vector.load %arg14[%c0, %c0_1] : memref<8x128xf32, #tpu.memory_space<vmem>>, vector<8x128xf32>
    %c0_2 = arith.constant 0 : index
    %c0_3 = arith.constant 0 : index
    %c0_4 = arith.constant 0 : index
    %4 = vector.load %arg9[%c0_2, %c0_3, %c0_4] : memref<1x8x384xf32, #tpu.memory_space<vmem>>, vector<1x8x384xf32>
    %5 = vector.shape_cast %4 : vector<1x8x384xf32> to vector<8x384xf32>
    %6 = vector.extract_strided_slice %5 {offsets = [0, 0], sizes = [1, 384], strides = [1, 1]} : vector<8x384xf32> to vector<1x384xf32>
    %7 = vector.extract_strided_slice %5 {offsets = [1, 0], sizes = [1, 128], strides = [1, 1]} : vector<8x384xf32> to vector<1x128xf32>
    %8 = vector.extract_strided_slice %5 {offsets = [2, 0], sizes = [1, 128], strides = [1, 1]} : vector<8x384xf32> to vector<1x128xf32>
    %9 = vector.extract_strided_slice %5 {offsets = [3, 0], sizes = [1, 128], strides = [1, 1]} : vector<8x384xf32> to vector<1x128xf32>
    %10 = vector.extract_strided_slice %5 {offsets = [4, 0], sizes = [1, 256], strides = [1, 1]} : vector<8x384xf32> to vector<1x256xf32>
    %11 = vector.extract_strided_slice %5 {offsets = [5, 0], sizes = [1, 128], strides = [1, 1]} : vector<8x384xf32> to vector<1x128xf32>
    %12 = vector.extract_strided_slice %5 {offsets = [6, 0], sizes = [1, 128], strides = [1, 1]} : vector<8x384xf32> to vector<1x128xf32>
    %13 = vector.extract_strided_slice %5 {offsets = [7, 0], sizes = [1, 128], strides = [1, 1]} : vector<8x384xf32> to vector<1x128xf32>
    %c0_5 = arith.constant 0 : index
    %c0_6 = arith.constant 0 : index
    %c0_7 = arith.constant 0 : index
    %14 = vector.load %arg5[%c0_5, %c0_6, %c0_7] : memref<1x128x384xbf16, #tpu.memory_space<vmem>>, vector<1x128x384xbf16>
    %15 = vector.shape_cast %14 : vector<1x128x384xbf16> to vector<128x384xbf16>
    %16 = arith.truncf %3 : vector<8x128xf32> to vector<8x128xbf16>
    %cst = arith.constant dense<0.000000e+00> : vector<8x384xf32>
    %17 = tpu.matmul %16, %15, %cst {dimension_numbers = #tpu.dot_dimension_numbers<[1], [0], [0], [1], [0, 0, 1, 1], [], []>} : vector<8x128xbf16>, vector<128x384xbf16>, vector<8x384xf32> -> vector<8x384xf32>
    %18 = vector.broadcast %6 : vector<1x384xf32> to vector<8x384xf32>
    %19 = arith.addf %17, %18 : vector<8x384xf32>
    %c0_8 = arith.constant 0 : index
    %c0_9 = arith.constant 0 : index
    %c0_10 = arith.constant 0 : index
    %20 = vector.load %arg3[%c0_8, %c0_9, %c0_10] : memref<1x1x8xf32, #tpu.memory_space<vmem>>, vector<1x1x8xf32>
    %21 = vector.shape_cast %20 : vector<1x1x8xf32> to vector<1x8xf32>
    %22 = vector.extract_strided_slice %19 {offsets = [0, 0], sizes = [8, 64], strides = [1, 1]} : vector<8x384xf32> to vector<8x64xf32>
    %23 = arith.truncf %22 : vector<8x64xf32> to vector<8x64xbf16>
    %24 = vector.extract_strided_slice %19 {offsets = [0, 128], sizes = [8, 64], strides = [1, 1]} : vector<8x384xf32> to vector<8x64xf32>
    %25 = arith.truncf %24 : vector<8x64xf32> to vector<8x64xbf16>
    %26 = vector.extract_strided_slice %19 {offsets = [0, 256], sizes = [8, 64], strides = [1, 1]} : vector<8x384xf32> to vector<8x64xf32>
    %27 = arith.truncf %26 : vector<8x64xf32> to vector<8x64xbf16>
    %cst_11 = arith.constant dense<0.000000e+00> : vector<8x8xf32>
    %28 = tpu.matmul %23, %25, %cst_11 {dimension_numbers = #tpu.dot_dimension_numbers<[1], [1], [0], [0], [0, 0, 1, 0], [], []>} : vector<8x64xbf16>, vector<8x64xbf16>, vector<8x8xf32> -> vector<8x8xf32>
    %cst_12 = arith.constant 1.250000e-01 : f32
    %29 = vector.broadcast %cst_12 : f32 to vector<8x8xf32>
    %30 = arith.mulf %28, %29 : vector<8x8xf32>
    %31 = vector.broadcast %21 : vector<1x8xf32> to vector<8x8xf32>
    %32 = arith.addf %30, %31 : vector<8x8xf32>
    %cst_13 = arith.constant dense<0xFF800000> : vector<8xf32>
    %33 = vector.multi_reduction <maximumf>, %32, %cst_13 [1] : vector<8x8xf32> to vector<8xf32>
    %34 = vector.shape_cast %33 : vector<8xf32> to vector<8x1xf32>
    %35 = vector.broadcast %34 : vector<8x1xf32> to vector<8x8xf32>
    %36 = arith.subf %32, %35 : vector<8x8xf32>
    %37 = math.exp %36 : vector<8x8xf32>
    %cst_14 = arith.constant dense<0.000000e+00> : vector<8xf32>
    %38 = vector.multi_reduction <add>, %37, %cst_14 [1] : vector<8x8xf32> to vector<8xf32>
    %39 = vector.shape_cast %38 : vector<8xf32> to vector<8x1xf32>
    %40 = tpu.reciprocal %39 {approx = true} : vector<8x1xf32> -> vector<8x1xf32>
    %41 = vector.broadcast %40 : vector<8x1xf32> to vector<8x8xf32>
    %42 = arith.mulf %37, %41 : vector<8x8xf32>
    %43 = arith.truncf %42 : vector<8x8xf32> to vector<8x8xbf16>
    %cst_15 = arith.constant dense<0.000000e+00> : vector<8x64xf32>
    %44 = tpu.matmul %43, %27, %cst_15 {dimension_numbers = #tpu.dot_dimension_numbers<[1], [0], [0], [1], [0, 0, 1, 1], [], []>} : vector<8x8xbf16>, vector<8x64xbf16>, vector<8x64xf32> -> vector<8x64xf32>
    %c0_16 = arith.constant 0 : index
    %c0_17 = arith.constant 0 : index
    %45 = vector.load %arg15[%c0_16, %c0_17] : memref<8x128xf32, #tpu.memory_space<vmem>>, vector<8x64xf32>
    tpu.vector_store %arg15[%c0_16, %c0_17], %44 {strides = array<i32>} : memref<8x128xf32, #tpu.memory_space<vmem>>, vector<8x64xf32>,
    %46 = vector.extract_strided_slice %19 {offsets = [0, 64], sizes = [8, 64], strides = [1, 1]} : vector<8x384xf32> to vector<8x64xf32>
    %47 = arith.truncf %46 : vector<8x64xf32> to vector<8x64xbf16>
    %48 = vector.extract_strided_slice %19 {offsets = [0, 192], sizes = [8, 64], strides = [1, 1]} : vector<8x384xf32> to vector<8x64xf32>
    %49 = arith.truncf %48 : vector<8x64xf32> to vector<8x64xbf16>
    %50 = vector.extract_strided_slice %19 {offsets = [0, 320], sizes = [8, 64], strides = [1, 1]} : vector<8x384xf32> to vector<8x64xf32>
    %51 = arith.truncf %50 : vector<8x64xf32> to vector<8x64xbf16>
    %cst_18 = arith.constant dense<0.000000e+00> : vector<8x8xf32>
    %52 = tpu.matmul %47, %49, %cst_18 {dimension_numbers = #tpu.dot_dimension_numbers<[1], [1], [0], [0], [0, 0, 1, 0], [], []>} : vector<8x64xbf16>, vector<8x64xbf16>, vector<8x8xf32> -> vector<8x8xf32>
    %cst_19 = arith.constant 1.250000e-01 : f32
    %53 = vector.broadcast %cst_19 : f32 to vector<8x8xf32>
    %54 = arith.mulf %52, %53 : vector<8x8xf32>
    %55 = vector.broadcast %21 : vector<1x8xf32> to vector<8x8xf32>
    %56 = arith.addf %54, %55 : vector<8x8xf32>
    %cst_20 = arith.constant dense<0xFF800000> : vector<8xf32>
    %57 = vector.multi_reduction <maximumf>, %56, %cst_20 [1] : vector<8x8xf32> to vector<8xf32>
    %58 = vector.shape_cast %57 : vector<8xf32> to vector<8x1xf32>
    %59 = vector.broadcast %58 : vector<8x1xf32> to vector<8x8xf32>
    %60 = arith.subf %56, %59 : vector<8x8xf32>
    %61 = math.exp %60 : vector<8x8xf32>
    %cst_21 = arith.constant dense<0.000000e+00> : vector<8xf32>
    %62 = vector.multi_reduction <add>, %61, %cst_21 [1] : vector<8x8xf32> to vector<8xf32>
    %63 = vector.shape_cast %62 : vector<8xf32> to vector<8x1xf32>
    %64 = tpu.reciprocal %63 {approx = true} : vector<8x1xf32> -> vector<8x1xf32>
    %65 = vector.broadcast %64 : vector<8x1xf32> to vector<8x8xf32>
    %66 = arith.mulf %61, %65 : vector<8x8xf32>
    %67 = arith.truncf %66 : vector<8x8xf32> to vector<8x8xbf16>
    %cst_22 = arith.constant dense<0.000000e+00> : vector<8x64xf32>
    %68 = tpu.matmul %67, %51, %cst_22 {dimension_numbers = #tpu.dot_dimension_numbers<[1], [0], [0], [1], [0, 0, 1, 1], [], []>} : vector<8x8xbf16>, vector<8x64xbf16>, vector<8x64xf32> -> vector<8x64xf32>
    %c0_23 = arith.constant 0 : index
    %c64 = arith.constant 64 : index
    %69 = vector.load %arg15[%c0_23, %c64] : memref<8x128xf32, #tpu.memory_space<vmem>>, vector<8x64xf32>
    tpu.vector_store %arg15[%c0_23, %c64], %68 {strides = array<i32>} : memref<8x128xf32, #tpu.memory_space<vmem>>, vector<8x64xf32>,
    %c0_24 = arith.constant 0 : index
    %c0_25 = arith.constant 0 : index
    %70 = vector.load %arg15[%c0_24, %c0_25] : memref<8x128xf32, #tpu.memory_space<vmem>>, vector<8x128xf32>
    %c0_26 = arith.constant 0 : index
    %c0_27 = arith.constant 0 : index
    %c0_28 = arith.constant 0 : index
    %71 = vector.load %arg6[%c0_26, %c0_27, %c0_28] : memref<1x128x128xbf16, #tpu.memory_space<vmem>>, vector<1x128x128xbf16>
    %72 = vector.shape_cast %71 : vector<1x128x128xbf16> to vector<128x128xbf16>
    %73 = arith.truncf %70 : vector<8x128xf32> to vector<8x128xbf16>
    %cst_29 = arith.constant dense<0.000000e+00> : vector<8x128xf32>
    %74 = tpu.matmul %73, %72, %cst_29 {dimension_numbers = #tpu.dot_dimension_numbers<[1], [0], [0], [1], [0, 0, 1, 1], [], []>} : vector<8x128xbf16>, vector<128x128xbf16>, vector<8x128xf32> -> vector<8x128xf32>
    %75 = vector.broadcast %7 : vector<1x128xf32> to vector<8x128xf32>
    %76 = arith.addf %74, %75 : vector<8x128xf32>
    %77 = arith.addf %76, %3 : vector<8x128xf32>
    %cst_30 = arith.constant dense<0.000000e+00> : vector<8xf32>
    %78 = vector.multi_reduction <add>, %77, %cst_30 [1] : vector<8x128xf32> to vector<8xf32>
    %79 = vector.shape_cast %78 : vector<8xf32> to vector<8x1xf32>
    %cst_31 = arith.constant 1.280000e+02 : f32
    %80 = vector.broadcast %cst_31 : f32 to vector<8x1xf32>
    %81 = arith.divf %79, %80 : vector<8x1xf32>
    %82 = vector.broadcast %81 : vector<8x1xf32> to vector<8x128xf32>
    %83 = arith.subf %77, %82 : vector<8x128xf32>
    %84 = arith.mulf %83, %83 : vector<8x128xf32>
    %cst_32 = arith.constant dense<0.000000e+00> : vector<8xf32>
    %85 = vector.multi_reduction <add>, %84, %cst_32 [1] : vector<8x128xf32> to vector<8xf32>
    %86 = vector.shape_cast %85 : vector<8xf32> to vector<8x1xf32>
    %cst_33 = arith.constant 1.280000e+02 : f32
    %87 = vector.broadcast %cst_33 : f32 to vector<8x1xf32>
    %88 = arith.divf %86, %87 : vector<8x1xf32>
    %89 = vector.broadcast %81 : vector<8x1xf32> to vector<8x128xf32>
    %90 = arith.subf %77, %89 : vector<8x128xf32>
    %cst_34 = arith.constant 9.99999996E-13 : f32
    %91 = vector.broadcast %cst_34 : f32 to vector<8x1xf32>
    %92 = arith.addf %88, %91 : vector<8x1xf32>
    %93 = math.rsqrt %92 : vector<8x1xf32>
    %94 = vector.broadcast %93 : vector<8x1xf32> to vector<8x128xf32>
    %95 = arith.mulf %90, %94 : vector<8x128xf32>
    %96 = vector.broadcast %8 : vector<1x128xf32> to vector<8x128xf32>
    %97 = arith.mulf %95, %96 : vector<8x128xf32>
    %98 = vector.broadcast %9 : vector<1x128xf32> to vector<8x128xf32>
    %99 = arith.addf %97, %98 : vector<8x128xf32>
    %c0_35 = arith.constant 0 : index
    %c0_36 = arith.constant 0 : index
    %c0_37 = arith.constant 0 : index
    %100 = vector.load %arg7[%c0_35, %c0_36, %c0_37] : memref<1x128x256xbf16, #tpu.memory_space<vmem>>, vector<1x128x256xbf16>
    %101 = vector.shape_cast %100 : vector<1x128x256xbf16> to vector<128x256xbf16>
    %102 = arith.truncf %99 : vector<8x128xf32> to vector<8x128xbf16>
    %cst_38 = arith.constant dense<0.000000e+00> : vector<8x256xf32>
    %103 = tpu.matmul %102, %101, %cst_38 {dimension_numbers = #tpu.dot_dimension_numbers<[1], [0], [0], [1], [0, 0, 1, 1], [], []>} : vector<8x128xbf16>, vector<128x256xbf16>, vector<8x256xf32> -> vector<8x256xf32>
    %104 = vector.broadcast %10 : vector<1x256xf32> to vector<8x256xf32>
    %105 = arith.addf %103, %104 : vector<8x256xf32>
    %106 = arith.mulf %105, %105 : vector<8x256xf32>
    %107 = arith.mulf %105, %106 : vector<8x256xf32>
    %cst_39 = arith.constant 4.471500e-02 : f32
    %108 = vector.broadcast %cst_39 : f32 to vector<8x256xf32>
    %109 = arith.mulf %108, %107 : vector<8x256xf32>
    %110 = arith.addf %105, %109 : vector<8x256xf32>
    %cst_40 = arith.constant 0.797884583 : f32
    %111 = vector.broadcast %cst_40 : f32 to vector<8x256xf32>
    %112 = arith.mulf %111, %110 : vector<8x256xf32>
    %113 = math.tanh %112 : vector<8x256xf32>
    %cst_41 = arith.constant 1.000000e+00 : f32
    %114 = vector.broadcast %cst_41 : f32 to vector<8x256xf32>
    %115 = arith.addf %114, %113 : vector<8x256xf32>
    %cst_42 = arith.constant 5.000000e-01 : f32
    %116 = vector.broadcast %cst_42 : f32 to vector<8x256xf32>
    %117 = arith.mulf %116, %115 : vector<8x256xf32>
    %118 = arith.mulf %105, %117 : vector<8x256xf32>
    %c0_43 = arith.constant 0 : index
    %c0_44 = arith.constant 0 : index
    %c0_45 = arith.constant 0 : index
    %119 = vector.load %arg8[%c0_43, %c0_44, %c0_45] : memref<1x256x128xbf16, #tpu.memory_space<vmem>>, vector<1x256x128xbf16>
    %120 = vector.shape_cast %119 : vector<1x256x128xbf16> to vector<256x128xbf16>
    %121 = arith.truncf %118 : vector<8x256xf32> to vector<8x256xbf16>
    %cst_46 = arith.constant dense<0.000000e+00> : vector<8x128xf32>
    %122 = tpu.matmul %121, %120, %cst_46 {dimension_numbers = #tpu.dot_dimension_numbers<[1], [0], [0], [1], [0, 0, 1, 1], [], []>} : vector<8x256xbf16>, vector<256x128xbf16>, vector<8x128xf32> -> vector<8x128xf32>
    %123 = vector.broadcast %11 : vector<1x128xf32> to vector<8x128xf32>
    %124 = arith.addf %122, %123 : vector<8x128xf32>
    %125 = arith.addf %124, %99 : vector<8x128xf32>
    %cst_47 = arith.constant dense<0.000000e+00> : vector<8xf32>
    %126 = vector.multi_reduction <add>, %125, %cst_47 [1] : vector<8x128xf32> to vector<8xf32>
    %127 = vector.shape_cast %126 : vector<8xf32> to vector<8x1xf32>
    %cst_48 = arith.constant 1.280000e+02 : f32
    %128 = vector.broadcast %cst_48 : f32 to vector<8x1xf32>
    %129 = arith.divf %127, %128 : vector<8x1xf32>
    %130 = vector.broadcast %129 : vector<8x1xf32> to vector<8x128xf32>
    %131 = arith.subf %125, %130 : vector<8x128xf32>
    %132 = arith.mulf %131, %131 : vector<8x128xf32>
    %cst_49 = arith.constant dense<0.000000e+00> : vector<8xf32>
    %133 = vector.multi_reduction <add>, %132, %cst_49 [1] : vector<8x128xf32> to vector<8xf32>
    %134 = vector.shape_cast %133 : vector<8xf32> to vector<8x1xf32>
    %cst_50 = arith.constant 1.280000e+02 : f32
    %135 = vector.broadcast %cst_50 : f32 to vector<8x1xf32>
    %136 = arith.divf %134, %135 : vector<8x1xf32>
    %137 = vector.broadcast %129 : vector<8x1xf32> to vector<8x128xf32>
    %138 = arith.subf %125, %137 : vector<8x128xf32>
    %cst_51 = arith.constant 9.99999996E-13 : f32
    %139 = vector.broadcast %cst_51 : f32 to vector<8x1xf32>
    %140 = arith.addf %136, %139 : vector<8x1xf32>
    %141 = math.rsqrt %140 : vector<8x1xf32>
    %142 = vector.broadcast %141 : vector<8x1xf32> to vector<8x128xf32>
    %143 = arith.mulf %138, %142 : vector<8x128xf32>
    %144 = vector.broadcast %12 : vector<1x128xf32> to vector<8x128xf32>
    %145 = arith.mulf %143, %144 : vector<8x128xf32>
    %146 = vector.broadcast %13 : vector<1x128xf32> to vector<8x128xf32>
    %147 = arith.addf %145, %146 : vector<8x128xf32>
    %c0_52 = arith.constant 0 : index
    %c0_53 = arith.constant 0 : index
    %148 = vector.load %arg14[%c0_52, %c0_53] : memref<8x128xf32, #tpu.memory_space<vmem>>, vector<8x128xf32>
    tpu.vector_store %arg14[%c0_52, %c0_53], %147 {strides = array<i32>} : memref<8x128xf32, #tpu.memory_space<vmem>>, vector<8x128xf32>,
    %c1_i32 = arith.constant 1 : i32
    %149 = arith.cmpi eq, %arg1, %c1_i32 : i32
    %150 = arith.extui %149 : i1 to i32
    %c0_i32_54 = arith.constant 0 : i32
    %151 = arith.cmpi ne, %150, %c0_i32_54 : i32
    scf.if %151 {
      %152 = vector.extract_strided_slice %147 {offsets = [0, 0], sizes = [1, 128], strides = [1, 1]} : vector<8x128xf32> to vector<1x128xf32>
      %153 = arith.truncf %152 : vector<1x128xf32> to vector<1x128xbf16>
      %c0_55 = arith.constant 0 : index
      %c0_56 = arith.constant 0 : index
      %154 = vector.load %arg10[%c0_55, %c0_56] : memref<128x128xbf16, #tpu.memory_space<vmem>>, vector<128x128xbf16>
      %cst_57 = arith.constant dense<0.000000e+00> : vector<1x128xf32>
      %155 = tpu.matmul %153, %154, %cst_57 {dimension_numbers = #tpu.dot_dimension_numbers<[1], [0], [0], [1], [0, 0, 1, 1], [], []>} : vector<1x128xbf16>, vector<128x128xbf16>, vector<1x128xf32> -> vector<1x128xf32>
      %c0_58 = arith.constant 0 : index
      %c0_59 = arith.constant 0 : index
      %156 = vector.load %arg12[%c0_58, %c0_59] : memref<2x128xf32, #tpu.memory_space<vmem>>, vector<1x128xf32>
      %157 = arith.addf %155, %156 : vector<1x128xf32>
      %158 = math.tanh %157 : vector<1x128xf32>
      %159 = arith.truncf %158 : vector<1x128xf32> to vector<1x128xbf16>
      %c0_60 = arith.constant 0 : index
      %c0_61 = arith.constant 0 : index
      %160 = vector.load %arg11[%c0_60, %c0_61] : memref<128x128xbf16, #tpu.memory_space<vmem>>, vector<128x128xbf16>
      %cst_62 = arith.constant dense<0.000000e+00> : vector<1x128xf32>
      %161 = tpu.matmul %159, %160, %cst_62 {dimension_numbers = #tpu.dot_dimension_numbers<[1], [0], [0], [1], [0, 0, 1, 1], [], []>} : vector<1x128xbf16>, vector<128x128xbf16>, vector<1x128xf32> -> vector<1x128xf32>
      %c1 = arith.constant 1 : index
      %c0_63 = arith.constant 0 : index
      %162 = vector.load %arg12[%c1, %c0_63] : memref<2x128xf32, #tpu.memory_space<vmem>>, vector<1x128xf32>
      %163 = arith.addf %161, %162 : vector<1x128xf32>
      %cst_64 = arith.constant dense<0xFF800000> : vector<1xf32>
      %164 = vector.multi_reduction <maximumf>, %163, %cst_64 [1] : vector<1x128xf32> to vector<1xf32>
      %165 = vector.shape_cast %164 : vector<1xf32> to vector<1x1xf32>
      %166 = vector.broadcast %165 : vector<1x1xf32> to vector<1x128xf32>
      %167 = arith.subf %163, %166 : vector<1x128xf32>
      %168 = math.exp %167 : vector<1x128xf32>
      %cst_65 = arith.constant dense<0.000000e+00> : vector<1xf32>
      %169 = vector.multi_reduction <add>, %168, %cst_65 [1] : vector<1x128xf32> to vector<1xf32>
      %170 = vector.shape_cast %169 : vector<1xf32> to vector<1x1xf32>
      %171 = vector.broadcast %170 : vector<1x1xf32> to vector<1x128xf32>
      %172 = arith.divf %168, %171 : vector<1x128xf32>
      %c0_66 = arith.constant 0 : index
      %c0_67 = arith.constant 0 : index
      %c0_68 = arith.constant 0 : index
      %173 = vector.load %arg13[%c0_66, %c0_67, %c0_68] : memref<1x1x128xf32, #tpu.memory_space<vmem>>, vector<1x1x128xf32>
      %174 = vector.shape_cast %173 : vector<1x1x128xf32> to vector<1x128xf32>
      %175 = vector.shape_cast %172 : vector<1x128xf32> to vector<1x1x128xf32>
      tpu.vector_store %arg13[%c0_66, %c0_67, %c0_68], %175 {strides = array<i32>} : memref<1x1x128xf32, #tpu.memory_space<vmem>>, vector<1x1x128xf32>,
    } else {
    }
    return
  }
  func.func @transform_0(%arg0: i32, %arg1: i32) -> (i32, i32) {
    %c0_i32 = arith.constant 0 : i32
    %c0_i32_0 = arith.constant 0 : i32
    return %arg0, %c0_i32 : i32, i32
  }
  func.func @transform_1(%arg0: i32, %arg1: i32) -> (i32, i32, i32) {
    %c0_i32 = arith.constant 0 : i32
    %c0_i32_0 = arith.constant 0 : i32
    %c0_i32_1 = arith.constant 0 : i32
    return %arg0, %c0_i32, %c0_i32_0 : i32, i32, i32
  }
  func.func @transform_2(%arg0: i32, %arg1: i32) -> (i32, i32) {
    %c0_i32 = arith.constant 0 : i32
    %c0_i32_0 = arith.constant 0 : i32
    %c0_i32_1 = arith.constant 0 : i32
    return %c0_i32, %c0_i32_0 : i32, i32
  }
  func.func @transform_3(%arg0: i32, %arg1: i32) -> (i32, i32, i32) {
    %c0_i32 = arith.constant 0 : i32
    %c0_i32_0 = arith.constant 0 : i32
    %c0_i32_1 = arith.constant 0 : i32
    return %arg1, %c0_i32, %c0_i32_0 : i32, i32, i32
  }
  func.func @transform_4(%arg0: i32, %arg1: i32) -> (i32, i32, i32) {
    %c0_i32 = arith.constant 0 : i32
    %c0_i32_0 = arith.constant 0 : i32
    %c0_i32_1 = arith.constant 0 : i32
    return %arg1, %c0_i32, %c0_i32_0 : i32, i32, i32
  }
  func.func @transform_5(%arg0: i32, %arg1: i32) -> (i32, i32, i32) {
    %c0_i32 = arith.constant 0 : i32
    %c0_i32_0 = arith.constant 0 : i32
    %c0_i32_1 = arith.constant 0 : i32
    return %arg1, %c0_i32, %c0_i32_0 : i32, i32, i32
  }
  func.func @transform_6(%arg0: i32, %arg1: i32) -> (i32, i32, i32) {
    %c0_i32 = arith.constant 0 : i32
    %c0_i32_0 = arith.constant 0 : i32
    %c0_i32_1 = arith.constant 0 : i32
    return %arg1, %c0_i32, %c0_i32_0 : i32, i32, i32
  }
  func.func @transform_7(%arg0: i32, %arg1: i32) -> (i32, i32, i32) {
    %c0_i32 = arith.constant 0 : i32
    %c0_i32_0 = arith.constant 0 : i32
    %c0_i32_1 = arith.constant 0 : i32
    return %arg1, %c0_i32, %c0_i32_0 : i32, i32, i32
  }
  func.func @transform_8(%arg0: i32, %arg1: i32) -> (i32, i32) {
    %c0_i32 = arith.constant 0 : i32
    %c0_i32_0 = arith.constant 0 : i32
    %c0_i32_1 = arith.constant 0 : i32
    return %c0_i32, %c0_i32_0 : i32, i32
  }
  func.func @transform_9(%arg0: i32, %arg1: i32) -> (i32, i32) {
    %c0_i32 = arith.constant 0 : i32
    %c0_i32_0 = arith.constant 0 : i32
    %c0_i32_1 = arith.constant 0 : i32
    return %c0_i32, %c0_i32_0 : i32, i32
  }
  func.func @transform_10(%arg0: i32, %arg1: i32) -> (i32, i32) {
    %c0_i32 = arith.constant 0 : i32
    %c0_i32_0 = arith.constant 0 : i32
    %c0_i32_1 = arith.constant 0 : i32
    return %c0_i32, %c0_i32_0 : i32, i32
  }
  func.func @transform_11(%arg0: i32, %arg1: i32) -> (i32, i32, i32) {
    %c0_i32 = arith.constant 0 : i32
    %c0_i32_0 = arith.constant 0 : i32
    %c0_i32_1 = arith.constant 0 : i32
    return %arg0, %c0_i32, %c0_i32_0 : i32, i32, i32
  }
}

</mosaic_0001>

<bundles_post_ra>
// kernel: bert_arch_forward.1
= control target key start
LH: loop header
LB: loop body
LE: loop exit
PB: predicated region body
PF: predicated region fallthrough
CT: control target
= control target key end

     0   :  { %s3311_s0 = inlined_call_operand.vmem [shape: f32[16,128], index: 0, kind: input, shape index: {}]   ;;  %s3312_s1 = inlined_call_operand.vmem [shape: f32[2,1,8], index: 1, kind: input, shape index: {}]   ;;  %s3313_s2 = inlined_call_operand.vmem [shape: f32[2,128], index: 2, kind: input, shape index: {}]   ;;  %s3314_s3 = inlined_call_operand.hbm [shape: bf16[2,128,384], index: 3, kind: input, shape index: {}]   ;;  %s3315_s4 = inlined_call_operand.vmem [shape: bf16[2,128,128], index: 4, kind: input, shape index: {}]   ;;  %s3316_s5 = inlined_call_operand.hbm [shape: bf16[2,128,256], index: 5, kind: input, shape index: {}]   ;;  %s3317_s6 = inlined_call_operand.hbm [shape: bf16[2,256,128], index: 6, kind: input, shape index: {}]   ;;  %s3318_s7 = inlined_call_operand.hbm [shape: f32[2,8,384], index: 7, kind: input, shape index: {}]   ;;  %s3319_s8 = inlined_call_operand.hbm [shape: bf16[128,128], index: 8, kind: input, shape index: {}]   ;;  %s3320_s9 = inlined_call_operand.hbm [shape: bf16[128,128], index: 9, kind: input, shape index: {}]   ;;  %s3321_s10 = inlined_call_operand.vmem [shape: f32[2,128], index: 10, kind: input, shape index: {}]   ;;  %s3322_s11 = inlined_call_operand.hbm [shape: f32[2,1,128], index: 11, kind: output, shape index: {}]  }
   0x1   :  { %3343 = sst [smem:[#allocation34_spill]] %s3311_s0 }
   0x2   :  { %3344 = sst [smem:[#allocation35_spill]] %s3312_s1 }
   0x3   :  { %3345 = sst [smem:[#allocation36_spill]] %s3313_s2 }
   0x4   :  { %3346 = sst [smem:[#allocation37_spill]] %s3314_s3 }
   0x5   :  { %3347 = sst [smem:[#allocation38_spill]] %s3315_s4 }
   0x6   :  { %3348 = sst [smem:[#allocation39_spill]] %s3316_s5 }
   0x7   :  { %3349 = sst [smem:[#allocation40_spill]] %s3317_s6 }
   0x8   :  { %3350 = sst [smem:[#allocation41_spill]] %s3319_s8 }
   0x9   :  { %3351 = sst [smem:[#allocation42_spill]] %s3321_s10 }
   0xa   :  { %3352 = sst [smem:[#allocation43_spill]] %s3322_s11 }
   0xb   :  { %16 = vsyncpa [#allocation5], 0 }
   0xc   :  { %18 = vsyncpa [#allocation5 + $0x1], 0 }
   0xd   :  { %19 = vsyncpa [#allocation8], 0 }
   0xe   :  { %21 = vsyncpa [#allocation8 + $0x1], 0 }
   0xf   :  { %22 = vsyncpa [#allocation11], 0 }
  0x10   :  { %24 = vsyncpa [#allocation11 + $0x1], 0 }
  0x11   :  { %25 = vsyncpa [#allocation14], 0 }
  0x12   :  { %26 = vsyncpa [#allocation6], 0 }
  0x13   :  { %28 = vsyncpa [#allocation6 + $0x1], 0  ;;  %s2843_s17 = smov 0   ;;  %s2845_s18 = smov 0  }
  0x14   :  { %s2847_s19 = smov 0   ;;  %s2849_s20 = smov 0  }
  0x15   :  { %s2851_s21 = smov 0   ;;  %s2853_s22 = smov 0  }
  0x16   :  { %s2855_s23 = smov 0   ;;  %s2857_s24 = smov 0  }
  0x17   :  { %s2859_s25 = smov 0   ;;  %s2861_s26 = smov 0  }
  0x18   :  { %s2863_s27 = smov 0  }
  0x19 LB: > { %3353 = sst [smem:[#allocation22_spill]] %s2730_s17  ;;  %s2897_s28 = sadd.s32 4294967295, %s2770_s27   ;;  %s2770_s27 = sphi %s2863_s27, %s34_s27   ;;  %s2766_s26 = sphi %s2861_s26, %s3404_s26   ;;  %s2762_s25 = sphi %s2859_s25, %s3411_s25   ;;  %s2758_s24 = sphi %s2857_s24, %s3410_s24   ;;  %s2754_s23 = sphi %s2855_s23, %s3409_s23   ;;  %s2750_s22 = sphi %s2853_s22, %s3401_s22   ;;  %s2746_s21 = sphi %s2851_s21, %s3408_s21   ;;  %s2742_s20 = sphi %s2849_s20, %s3407_s20   ;;  %s2738_s19 = sphi %s2847_s19, %s3399_s19   ;;  %s2734_s18 = sphi %s2845_s18, %s3406_s18   ;;  %s2730_s17 = sphi %s2843_s17, %s3405_s17  }
  0x1a   : > { %3354 = sst [smem:[#allocation23_spill]] %s2738_s19  ;;  %s1836_s29 = sadd.s32 4294967294, %s2770_s27  }
  0x1b   : > { %3355 = sst [smem:[#allocation24_spill]] %s2750_s22  ;;  %p139_p0 = scmp.ne.s32.totalorder %s2746_s21, %s2742_s20 }
  0x1c   : > { %3356 = sst [smem:[#allocation25_spill]] %s2754_s23  ;;  %p3330_p1 = scmp.eq.s32.totalorder %s2897_s28, 0 }
  0x1d   : > { %3357 = sst [smem:[#allocation26_spill]] %s2758_s24  ;;  %p329_p2 = scmp.ne.s32.totalorder %s2738_s19, %s2734_s18 }
  0x1e   : > { %3358 = sst [smem:[#allocation27_spill]] %s2766_s26  ;;  %p2907_p3 = por %p3330_p1, %p139_p0 }
  0x1f   : > { %p330_p4 = scmp.eq.s32.totalorder %s2897_s28, 3  ;;  %p335_p5 = scmp.ne.s32.totalorder %s2734_s18, %s2730_s17 }
  0x20   : > { %p336_p6 = scmp.eq.s32.totalorder %s1836_s29, 3  ;;  %p1837_p8 = scmp.ge.s32.totalorder %s2770_s27, 1 }
  0x21   : > { %p2914_p7 = por %p330_p4, %p329_p2  ;;  %p343_p10 = scmp.lt.s32.totalorder %s2770_s27, 5 }
  0x22   : > { %p2919_p9 = por %p336_p6, %p335_p5  ;;  %s3364_s8 = sld [smem:[#allocation41_spill]] }
  0x23   : > { %s3360_s13 = scalar_select %p2914_p7, 1, 0 }
  0x24   : > { %s3362_s14 = scalar_select %p2919_p9, 1, 0 }
  0x25   : > { %3361 = sst [smem:[#allocation28_spill]] %s3360_s13  ;;  %p2927_p11 = pnand %p1837_p8, %p343_p10 }
  0x26   : > { %3363 = sst [smem:[#allocation29_spill]] %s3362_s14  ;;  %s2772_s30 = smov [#allocation12]  }
  0x27   : > { %p2292_p12 = pneg %p2927_p11  ;;  %s359_s14 = sshll.u32 %s2772_s30, 4  ;;  %s360_s14 = int_to_ptr.vmem [resolvable:$true] %s359_s14 }
  0x28   : > { %s357_s20 = sshll.u32 %s3364_s8, 4  ;;  %s3328_s16 = smov 64   ;;  %s358_s20 = int_to_ptr.hbm [resolvable:$true] %s357_s20 }
  0x29   : > { %p2935_p13 = pnand %p2292_p12, %p3330_p1  ;;  %s3331_s8 = smov 4  }
  0x2a   : > { %s43_s17 = sadd.s32 1, %s2762_s25  ;;  %s46_s30 = sadd.s32 1, %s2766_s26 }
  0x2b   : > { %2295 = dma.hbm_to_vmem [thread:$0]  (!%p2935_p13), %s358_s20, 1024, %s360_s14, [#allocation11], %s3328_s16, %s3328_s16, %s3331_s8  }
  0x2c   : > { %p44_p0 = scmp.ge.s32.totalorder %s43_s17, 2  ;;  %s126_s13 = sadd.s32 1, %s2750_s22 }
  0x2d   : > { %p133_p2 = scmp.ne.s32.totalorder %s2750_s22, %s2746_s21  ;;  %p134_p4 = scmp.eq.s32.totalorder %s2770_s27, 0 }
  0x2e   : > { %s3413_s17 = smov (%p44_p0, %s43_s17), 0  ;;  %s3415_s30 = smov (!%p44_p0, %s46_s30), %s2766_s26 }
  0x2f   : > { %3367 = sst [smem:[#allocation30_spill]] %s3413_s17  ;;  %s123_s11 = ssub.s32 %s2762_s25, %s3413_s17 }
  0x30   : > { %p48_p5 = scmp.ge.s32.totalorder %s3415_s30, 2  ;;  %p124_p6 = scmp.eq.s32.totalorder %s123_s11, 0 }
  0x31   : > { %p135_p8 = por %p134_p4, %p133_p2  ;;  %p2318_p10 = scmp.lt.s32.totalorder %s2770_s27, 4 }
  0x32   : > { %s3417_s30 = smov (%p48_p5, %s3415_s30), 0  ;;  %s2964_s16 = sand.u32 1, %s2750_s22  }
  0x33   : > { %3368 = sst [smem:[#allocation31_spill]] %s3417_s30  ;;  %s316_s20 = ssub.s32 %s2766_s26, %s3417_s30 }
  0x34   : > { %s2959_s14 = scalar_select %p124_p6, %s2750_s22, %s126_s13  }
  0x35   : > { %p317_p12 = scmp.eq.s32.totalorder %s316_s20, 0  ;;  %p2966_p1 = pnand %p2318_p10, %p135_p8 }
  0x36   : > { %3369 = sst [smem:[#allocation32_spill]] %s2959_s14  ;;  %s3340_s17 = sand.u32 1, %s2770_s27  }
  0x37   : > { %s1842_s11 = sshll.u32 %s2964_s16, 7  ;;  %s3371_s10 = sadd.s32 1, %s2738_s19 }
  0x38   : > { %s2975_s2 = scalar_select %p317_p12, %s2738_s19, %s3371_s10  }
  0x39   : > { %s2185_s4 = sshll.u32 %s2762_s25, 7  ;;  %s3373_s5 = sld [smem:[#allocation39_spill]] }
  0x3a   : > { %3372 = sst [smem:[#allocation33_spill]] %s2975_s2  ;;  %s437_s30 = scalar_lea.vmem [#allocation7], %s1842_s11 }
  0x3b   : > { %s445_s26 = sshll.u32 %s437_s30, 4  ;;  %s2983_s20 = scalar_lea.sflag [#allocation8], %s3340_s17  ;;  %s446_s26 = int_to_ptr.vmem [resolvable:$true] %s445_s26 }
  0x3c   : > { %s2775_s22 = smov 128   ;;  %s2776_s10 = smov 8  }
  0x3d   : > { %s3374_s6 = sld [smem:[#allocation40_spill]]  ;;  %s459_s1 = scalar_lea.vmem [#allocation9], %s1842_s11 }
  0x3e   : > { %s467_s30 = sshll.u32 %s459_s1, 4  ;;  %s371_s23 = sshll.u32 %s3320_s9, 4  ;;  %s468_s30 = int_to_ptr.vmem [resolvable:$true] %s467_s30  ;;  %s372_s23 = int_to_ptr.hbm [resolvable:$true] %s371_s23 }
  0x3f   : > { %s442_s13 = scalar_lea.hbm %s3373_s5, %s2185_s4  ;;  %s2777_s24 = smov [#allocation13]  }
  0x40   : > { %s443_s14 = sshll.u32 %s442_s13, 4  ;;  %s2268_s2 = smul.u32 192, %s2964_s16  ;;  %s444_s14 = int_to_ptr.hbm [resolvable:$true] %s443_s14 }
  0x41   : > { %2305 = dma.hbm_to_vmem [thread:$0]  (!%p2966_p1), %s444_s14, 2048, %s446_s26, %s2983_s20, %s2775_s22, %s2775_s22, %s2776_s10  }
  0x42   : > { %s373_s22 = sshll.u32 %s2777_s24, 4  ;;  %s3376_s19 = smov 64   ;;  %s374_s22 = int_to_ptr.vmem [resolvable:$true] %s373_s22 }
  0x43   : > { %s464_s0 = scalar_lea.hbm %s3374_s6, %s2185_s4  ;;  %s3375_s4 = smov 4  }
  0x44   : > { %s465_s13 = sshll.u32 %s464_s0, 4  ;;  %s2269_s26 = smul.u32 192, %s2762_s25  ;;  %s466_s13 = int_to_ptr.hbm [resolvable:$true] %s465_s13 }
  0x45   : > { %2298 = dma.hbm_to_vmem [thread:$0]  (!%p2935_p13), %s372_s23, 1024, %s374_s22, [#allocation14], %s3376_s19, %s3376_s19, %s3375_s4  }
  0x46   : > { %s407_s14 = scalar_lea.vmem [#allocation4], %s2268_s2  ;;  %s3377_s3 = sld [smem:[#allocation37_spill]] }
  0x47   : > { %s415_s11 = sshll.u32 %s407_s14, 4  ;;  %s404_s24 = scalar_lea.sflag [#allocation5], %s2964_s16  ;;  %s416_s11 = int_to_ptr.vmem [resolvable:$true] %s415_s11 }
  0x48   : > { %s2778_s1 = smov 192   ;;  %s2779_s6 = smov 12  }
  0x49   : > { %2308 = dma.hbm_to_vmem [thread:$0]  (!%p2966_p1), %s466_s13, 2048, %s468_s30, %s2983_s20, %s3376_s19, %s3376_s19, %s3375_s4  }
  0x4a   : > { %s2270_s23 = smul.u32 24, %s2964_s16 }
  0x4b   : > { %s2271_s15 = smul.u32 24, %s2762_s25 }
  0x4c   : > { %s412_s10 = scalar_lea.hbm %s3377_s3, %s2269_s26  ;;  %s481_s14 = scalar_lea.vmem [#allocation10], %s2270_s23 }
  0x4d   : > { %s413_s0 = sshll.u32 %s412_s10, 4  ;;  %s486_s26 = scalar_lea.hbm %s3318_s7, %s2271_s15  ;;  %s414_s0 = int_to_ptr.hbm [resolvable:$true] %s413_s0 }
  0x4e   : > { %2302 = dma.hbm_to_vmem [thread:$0]  (!%p2966_p1), %s414_s0, 3072, %s416_s11, %s404_s24, %s2778_s1, %s2778_s1, %s2779_s6  }
  0x4f   : > { %s490_s5 = sshll.u32 %s481_s14, 4  ;;  %s488_s17 = sshll.u32 %s486_s26, 4  ;;  %s491_s5 = int_to_ptr.vmem [resolvable:$true] %s490_s5  ;;  %s489_s17 = int_to_ptr.hbm [resolvable:$true] %s488_s17 }
  0x50   : > { %s3378_s10 = sand.u32 1, %s2770_s27   ;;  %499 = sbr.rel (%p2927_p11) target bundleno = 3148 (0xc4c), region = 64 }
  0x51   : > { %s478_s3 = scalar_lea.sflag [#allocation11], %s3378_s10  ;;  %s501_s6 = sand.u32 (!%p2927_p11), 1, %s2746_s21  }
  0x52   : > { %2311 = dma.hbm_to_vmem [thread:$0]  (!%p2966_p1), %s489_s17, 384, %s491_s5, %s478_s3  }
  0x53   : > { %s2272_s16 = smul.u32 (!%p2927_p11), 192, %s501_s6  ;;  %s502_s20 = scalar_lea.sflag (!%p2927_p11), [#allocation5], %s501_s6 }
  0x55   : > { %s3025_s30 = scalar_lea.vmem [#allocation4], %s2272_s16 }
  0x56   : > { %2705 = dma.done.wait (%p2907_p3), %s502_s20, 3072  }
  0x57   : > { %2707 = vsyncadd (%p2907_p3), %s502_s20, 4294964224  ;;  %s511_s13 = sand.u32 1, %s2897_s28   ;;  %s1850_s8 = sshll.u32 %s501_s6, 7 }
  0x58   : > { %s512_s3 = scalar_lea.sflag [#allocation8], %s511_s13  ;;  %s3032_s4 = scalar_lea.vmem [#allocation7], %s1850_s8 }
  0x59   : > { %2709 = dma.done.wait (%p2907_p3), %s512_s3, 4096  }
  0x5a   : > { %2711 = vsyncadd (%p2907_p3), %s512_s3, 4294963200  ;;  %s2273_s29 = smul.u32 24, %s501_s6  ;;  %s3038_s19 = scalar_lea.vmem [#allocation9], %s1850_s8 }
  0x5b   : > { %s532_s11 = scalar_lea.sflag [#allocation11], %s511_s13 }
  0x5c   : > { %s3040_s0 = scalar_lea.vmem [#allocation10], %s2273_s29 }
  0x5d   : > { %2713 = dma.done.wait (%p2907_p3), %s532_s11, 384  }
  0x5e   : > { %2715 = vsyncadd (%p2907_p3), %s532_s11, 4294966912  ;;  %p3379_p1 = scmp.eq.s32.totalorder %s2897_s28, 0 }
  0x60   : > { %2717 = dma.done.wait (%p3379_p1), [#allocation11], 1024   ;;  %p3380_p11 = pmov %p3379_p1 }
  0x61   : > { %p3381_p13 = pmov %p3379_p1 }
  0x62   : > { %2719 = vsyncadd (%p3380_p11), [#allocation11], 4294966272 }
  0x63   : > { %2721 = dma.done.wait (%p3381_p13), [#allocation14], 1024   ;;  %p3382_p0 = pmov %p3379_p1 }
  0x64   : > { %s3383_s24 = sld [smem:[#allocation26_spill]]  ;;  %s609_s12 = sand.u32 1, %s2734_s18  }
  0x65   : > { %2723 = vsyncadd (%p3382_p0), [#allocation14], 4294966272  ;;  %s3384_s1 = sld [smem:[#allocation25_spill]]  ;;  %s3076_s3 = scalar_lea.vmem [#allocation15], %s609_s12 }
  0x66   : > { %s3385_s26 = sld [smem:[#allocation35_spill]] }
  0x67   : > { %s3386_s17 = sld [smem:[#allocation34_spill]] }
  0x68   : > { %s3387_s13 = sld [smem:[#allocation38_spill]] }
  0x6a   : > { %p611_p3 = scmp.lt.s32.totalorder %s3383_s24, 1 }
  0x6b   : > { %p618_p2 = scmp.lt.s32.totalorder %s3384_s1, 1  ;;  %p1857_p4 = scmp.ne.s32.totalorder %s3384_s1, 0 }
  0x6c   : > { %s3419_s24 = smov (!%p611_p3, %s3383_s24), 1 }
  0x6d   : > { %s619_s23 = scalar_select %p618_p2, %s3384_s1, 1 }
  0x6e   : > { %s1854_s15 = sshll.u32 %s3419_s24, 3  ;;  %s617_s28 = scalar_lea.vmem %s3385_s26, %s3419_s24 }
  0x6f   : > { %s614_s10 = scalar_lea.vmem %s3386_s17, %s1854_s15  ;;  %s2187_s6 = sshll.u32 %s619_s23, 6 }
  0x70   : > { %s3072_s8 = scalar_lea.vmem %s3387_s13, %s2187_s6  ;;  %627 = sbr.rel (%p1857_p4) target bundleno = 385 (0x181), region = 92 }
  0x71   : > { %s3388_s1 = sld [smem:[#allocation36_spill]] (!%p1857_p4) }
  0x75   : > { %v628_v0 = vld [vmem:[%s614_s10] sm:$0xff]  ;;  %v2780_v1 = vmov 128.0  }
  0x76   : > { %631 = vadd.xlane.f32.xlu0 %v628_v0  ;;  %2423 = vrcp.f32 %v2780_v1 }
  0x77   : > { %v2421_v21 = vld [vmem:[%s3388_s1] ss:$0 sm:$0xff]  ;;  %v2422_v23 = vld [vmem:[%s3388_s1 + $0x1] ss:$0 sm:$0xff] }
  0x7c   : > { %v2424_v2 = vpop.eup %2423 }
  0x7d   : > { %v634_v3 = vmul.f32 128.0, %v2424_v2  ;;  %vm638_vm0 = vweird.f32 %v2424_v2 }
  0x7f   : > { %v635_v4 = vsub.f32 1.0, %v634_v3 }
  0x81   : > { %v636_v5 = vmul.f32 %v2424_v2, %v635_v4 }
  0x83   : > { %v637_v6 = vadd.f32 %v2424_v2, %v636_v5 }
  0x85   : > { %v639_v7 = vsel %vm638_vm0, %v2424_v2, %v637_v6 }
  0xe9   : > { %v632_v8 = vpop.xlane.xlu0 %631 }
  0xea   : > { %v640_v9 = vmul.f32 %v639_v7, %v632_v8 }
  0xec   : > { %v641_v10 = vsub.f32 %v628_v0, %v640_v9 }
  0xee   : > { %v642_v11 = vmul.f32 %v641_v10, %v641_v10 }
  0xf0   : > { %643 = vadd.xlane.f32.xlu0 %v642_v11 }
 0x163   : > { %v644_v12 = vpop.xlane.xlu0 %643 }
 0x164   : > { %v645_v13 = vmul.f32 %v644_v12, %v639_v7 }
 0x166   : > { %v646_v14 = vadd.f32 1e-12, %v645_v13 }
 0x168   : > { %2425 = vrsqrt.f32 %v646_v14  ;;  %vm653_vm2 = vweird.f32 %v646_v14 }
 0x16e   : > { %v2426_v15 = vpop.eup %2425 }
 0x16f   : > { %v648_v16 = vmul.f32 %v2426_v15, %v646_v14  ;;  %vm654_vm1 = vweird.f32 %v2426_v15 }
 0x170   : > { %vm655_vm3 = vmor %vm653_vm2, %vm654_vm1 }
 0x171   : > { %v649_v17 = vmul.f32 %v2426_v15, %v648_v16 }
 0x173   : > { %v650_v18 = vmul.f32 0.5, %v649_v17 }
 0x175   : > { %v651_v19 = vsub.f32 1.5, %v650_v18 }
 0x177   : > { %v652_v20 = vmul.f32 %v2426_v15, %v651_v19 }
 0x179   : > { %v656_v22 = vsel %vm655_vm3, %v2426_v15, %v652_v20 }
 0x17a   : > { %v657_v24 = vmul.f32 %v656_v22, %v641_v10 }
 0x17c   : > { %v659_v25 = vmul.f32 %v2421_v21, %v657_v24 }
 0x17e   : > { %v661_v26 = vadd.f32 %v2422_v23, %v659_v25 }
 0x180   : > { %662 = vst [vmem:[#allocation2] sm:$0xff] %v661_v26 }
 0x181 PF: > { %v1944_v27 = vld [vmem:[%s3025_s30 + $0xa8] sm:$0xf]  ;;  %v2210_v28 = vld [vmem:[%s3025_s30 + $0xb0] sm:$0xf0]  ;;  %v2209_v29 = vld [vmem:[%s3025_s30 + $0xac] sm:$0xf] }
 0x182   : > { %v1945_v30 = vor.u32 %v2210_v28, %v1944_v27  ;;  %v1946_v31 = vld [vmem:[%s3025_s30 + $0xb4] sm:$0xf0]  ;;  %v1932_v32 = vld [vmem:[%s3025_s30 + $0x90] sm:$0xf]  ;;  %v2207_v33 = vld [vmem:[%s3025_s30 + $0x98] sm:$0xf0] }
 0x183   : > { %v1949_v34 = vor.u32 %v2209_v29, %v1946_v31  ;;  %v2206_v35 = vld [vmem:[%s3025_s30 + $0x94] sm:$0xf]  ;;  %v1934_v36 = vld [vmem:[%s3025_s30 + $0x9c] sm:$0xf0]  ;;  %v1933_v37 = vor.u32 %v2207_v33, %v1932_v32  ;;  %v1920_v39 = vld [vmem:[%s3025_s30 + $0x78] sm:$0xf] }
 0x184   : > { %831 = vmatpush.bf16.msra.mxu0 %v1945_v30  ;;  %v1937_v38 = vor.u32 %v2206_v35, %v1934_v36  ;;  %v2204_v40 = vld [vmem:[%s3025_s30 + $0x80] sm:$0xf0]  ;;  %v2203_v41 = vld [vmem:[%s3025_s30 + $0x7c] sm:$0xf]  ;;  %v1922_v42 = vld [vmem:[%s3025_s30 + $0x84] sm:$0xf0] }
 0x185   : > { %844 = vmatpush.bf16.msra.mxu1 %v1949_v34  ;;  %v1921_v43 = vor.u32 %v2204_v40, %v1920_v39  ;;  %v1925_v44 = vor.u32 %v2203_v41, %v1922_v42  ;;  %v1908_v45 = vld [vmem:[%s3025_s30 + $0x60] sm:$0xf]  ;;  %v2201_v46 = vld [vmem:[%s3025_s30 + $0x68] sm:$0xf0]  ;;  %v2200_v47 = vld [vmem:[%s3025_s30 + $0x64] sm:$0xf] }
 0x186   : > { %v1910_v48 = vld [vmem:[%s3025_s30 + $0x6c] sm:$0xf0]  ;;  %v1909_v49 = vor.u32 %v2201_v46, %v1908_v45  ;;  %v2211_v51 = vld [vmem:[%s3025_s30 + $0xb8] sm:$0xf0]  ;;  %v1940_v52 = vld [vmem:[%s3025_s30 + $0x98] sm:$0xf] }
 0x187   : > { %v1952_v50 = vld [vmem:[%s3025_s30 + $0xb0] sm:$0xf]  ;;  %v1913_v53 = vor.u32 %v2200_v47, %v1910_v48  ;;  %v1896_v54 = vld [vmem:[%s3025_s30 + $0x48] sm:$0xf]  ;;  %v2198_v55 = vld [vmem:[%s3025_s30 + $0x50] sm:$0xf0] }
 0x188   : > { %832 = vmatpush.bf16.msra.mxu0 %v1933_v37  ;;  %v1953_v56 = vor.u32 %v2211_v51, %v1952_v50  ;;  %v2208_v57 = vld [vmem:[%s3025_s30 + $0xa0] sm:$0xf0]  ;;  %v2197_v58 = vld [vmem:[%s3025_s30 + $0x4c] sm:$0xf]  ;;  %v1898_v59 = vld [vmem:[%s3025_s30 + $0x54] sm:$0xf0]  ;;  %v1897_v61 = vor.u32 %v2198_v55, %v1896_v54 }
 0x189   : > { %845 = vmatpush.bf16.msra.mxu1 %v1937_v38  ;;  %v1941_v60 = vor.u32 %v2208_v57, %v1940_v52  ;;  %v1928_v62 = vld [vmem:[%s3025_s30 + $0x80] sm:$0xf]  ;;  %v2205_v63 = vld [vmem:[%s3025_s30 + $0x88] sm:$0xf0]  ;;  %v1901_v0 = vor.u32 %v2197_v58, %v1898_v59  ;;  %v1884_v1 = vld [vmem:[%s3025_s30 + $0x30] sm:$0xf] }
 0x18a   : > { %857 = vmatpush.bf16.msra.mxu2 %v1953_v56  ;;  %v2195_v2 = vld [vmem:[%s3025_s30 + $0x38] sm:$0xf0]  ;;  %v2194_v3 = vld [vmem:[%s3025_s30 + $0x34] sm:$0xf]  ;;  %v1886_v4 = vld [vmem:[%s3025_s30 + $0x3c] sm:$0xf0]  ;;  %v1929_v5 = vor.u32 %v2205_v63, %v1928_v62 }
 0x18b   : > { %v1885_v6 = vor.u32 %v2195_v2, %v1884_v1  ;;  %v1916_v7 = vld [vmem:[%s3025_s30 + $0x68] sm:$0xf]  ;;  %v2202_v8 = vld [vmem:[%s3025_s30 + $0x70] sm:$0xf0]  ;;  %v1889_v9 = vor.u32 %v2194_v3, %v1886_v4  ;;  %v1872_v10 = vld [vmem:[%s3025_s30 + $0x18] sm:$0xf] }
 0x18c   : > { %833 = vmatpush.bf16.msra.mxu0 %v1921_v43  ;;  %v2192_v11 = vld [vmem:[%s3025_s30 + $0x20] sm:$0xf0]  ;;  %v2191_v12 = vld [vmem:[%s3025_s30 + $0x1c] sm:$0xf]  ;;  %v1874_v13 = vld [vmem:[%s3025_s30 + $0x24] sm:$0xf0]  ;;  %v1917_v14 = vor.u32 %v2202_v8, %v1916_v7 }
 0x18d   : > { %846 = vmatpush.bf16.msra.mxu1 %v1925_v44  ;;  %v1873_v15 = vor.u32 %v2192_v11, %v1872_v10  ;;  %v1904_v16 = vld [vmem:[%s3025_s30 + $0x50] sm:$0xf]  ;;  %v2199_v17 = vld [vmem:[%s3025_s30 + $0x58] sm:$0xf0]  ;;  %v1877_v18 = vor.u32 %v2191_v12, %v1874_v13  ;;  %v1860_v19 = vld [vmem:[%s3025_s30] sm:$0xf] }
 0x18e   : > { %858 = vmatpush.bf16.msra.mxu2 %v1941_v60  ;;  %v2189_v20 = vld [vmem:[%s3025_s30 + $0x8] sm:$0xf0]  ;;  %v2188_v21 = vld [vmem:[%s3025_s30 + $0x4] sm:$0xf]  ;;  %v1862_v22 = vld [vmem:[%s3025_s30 + $0xc] sm:$0xf0]  ;;  %v1905_v23 = vor.u32 %v2199_v17, %v1904_v16 }
 0x18f   : > { %v1861_v24 = vor.u32 %v2189_v20, %v1860_v19  ;;  %v3127_v25 = vld [vmem:[#allocation2] sm:$0xff]  ;;  %v1892_v26 = vld [vmem:[%s3025_s30 + $0x38] sm:$0xf]  ;;  %v2196_v27 = vld [vmem:[%s3025_s30 + $0x40] sm:$0xf0]  ;;  %v1865_v28 = vor.u32 %v2188_v21, %v1862_v22  ;;  %vm874_vm4 = vcmask 523264  }
 0x190   : > { %834 = vmatpush.bf16.msra.mxu0 %v1909_v49  ;;  %v699_v29 = vpack.c.bf16 %v3127_v25, %v3127_v25  ;;  %v1893_v30 = vor.u32 %v2196_v27, %v1892_v26  ;;  %v1880_v31 = vld [vmem:[%s3025_s30 + $0x20] sm:$0xf]  ;;  %v2193_v32 = vld [vmem:[%s3025_s30 + $0x28] sm:$0xf0]  ;;  %v1868_v34 = vld [vmem:[%s3025_s30 + $0x8] sm:$0xf] }
 0x191   : > { %847 = vmatpush.bf16.msra.mxu1 %v1913_v53  ;;  %v1881_v33 = vor.u32 %v2193_v32, %v1880_v31  ;;  %v2190_v35 = vld [vmem:[%s3025_s30 + $0x10] sm:$0xf0]  ;;  %v3138_v37 = vld [vmem:[%s3040_s0 + $0x8] sm:$0xff]  ;;  %v3142_v39 = vld [vmem:[%s3040_s0] sm:$0xff]  ;;  %s2781_s30 = smov 64   ;;  %vm915_vm5 = vcmask 1043456  }
 0x192   : > { %859 = vmatpush.bf16.msra.mxu2 %v1929_v5  ;;  %v1869_v36 = vor.u32 %v2190_v35, %v1868_v34  ;;  %v701_v38 = vperm.slane %v3138_v37, 0  ;;  %v700_v42 = vperm.slane %v3142_v39, 0  ;;  %v666_v52 = vld [vmem:[%s3040_s0 + $0x10] sm:$0xff]  ;;  %vm899_vm6 = vcmask 64512   ;;  %v2218_v31 = vld [vmem:[%s3072_s8 + $0x30] sm:$0xff]  ;;  %v2217_v32 = vld [vmem:[%s3072_s8 + $0x28] sm:$0xff] }
 0x193   : > { %v702_v53 = vperm.slane %v666_v52, 0  ;;  %v2427_v59 = vld [vmem:[%s617_s28] ss:$0 sm:$0xff]  ;;  %v2215_v34 = vld [vmem:[%s3072_s8 + $0x18] sm:$0xff]  ;;  %v2214_v35 = vld [vmem:[%s3072_s8 + $0x10] sm:$0xff]  ;;  %vm998_vm7 = vcmask 1048064  }
 0x194   : > { %835 = vmatpush.bf16.msra.mxu0 %v1897_v61  ;;  %v2235_v52 = vld [vmem:[%s3032_s4 + $0x74] sm:$0xf0] }
 0x195   : > { %848 = vmatpush.bf16.msra.mxu1 %v1901_v0 }
 0x196   : > { %860 = vmatpush.bf16.msra.mxu2 %v1917_v14 }
 0x198   : > { %836 = vmatpush.bf16.msra.mxu0 %v1885_v6 }
 0x199   : > { %849 = vmatpush.bf16.msra.mxu1 %v1889_v9 }
 0x19a   : > { %861 = vmatpush.bf16.msra.mxu2 %v1905_v23 }
 0x19c   : > { %837 = vmatpush.bf16.msra.mxu0 %v1873_v15 }
 0x19d   : > { %850 = vmatpush.bf16.msra.mxu1 %v1877_v18 }
 0x19e   : > { %862 = vmatpush.bf16.msra.mxu2 %v1893_v30  ;;  %v2219_v30 = vld [vmem:[%s3072_s8 + $0x38] sm:$0xff] }
 0x1a0   : > { %838 = vmatpush.bf16.msra.mxu0 %v1861_v24 }
 0x1a1   : > { %851 = vmatpush.bf16.msra.mxu1 %v1865_v28 }
 0x1a2   : > { %863 = vmatpush.bf16.msra.mxu2 %v1881_v33  ;;  %v2216_v33 = vld [vmem:[%s3072_s8 + $0x20] sm:$0xff] }
 0x1a3   : > { %839 = vmatmul.bf16.vlgmr.msra.gmra.mxu0 %v699_v29 }
 0x1a4   : > { %852 = vmatmul.bf16.vlgmr.msra.gmra.mxu1 %v699_v29 }
 0x1a5   : > { %1067 = vmatpush.bf16.msrb.mxu1 %v2219_v30 }
 0x1a6   : > { %864 = vmatpush.bf16.msra.mxu2 %v1869_v36 }
 0x1a9   : > { %865 = vmatmul.bf16.vlgmr.msra.gmra.mxu2 %v699_v29  ;;  %1068 = vmatpush.bf16.msrb.mxu1 %v2218_v31  ;;  %v2010_v31 = vld [vmem:[%s3032_s4 + $0x28] sm:$0xf0] }
 0x1ad   : > { %1069 = vmatpush.bf16.msrb.mxu1 %v2217_v32 }
 0x1b1   : > { %1070 = vmatpush.bf16.msrb.mxu1 %v2216_v33  ;;  %v2000_v33 = vld [vmem:[%s3032_s4 + $0x10] sm:$0xf] }
 0x1b5   : > { %1071 = vmatpush.bf16.msrb.mxu1 %v2215_v34  ;;  %v2223_v34 = vld [vmem:[%s3032_s4 + $0x14] sm:$0xf0] }
 0x1b9   : > { %1072 = vmatpush.bf16.msrb.mxu1 %v2214_v35  ;;  %v2222_v35 = vld [vmem:[%s3032_s4 + $0x14] sm:$0xf] }
 0x220   : > { %v840_v40 = vpop.f32.mrf.mxu0 }
 0x221   : > { %v853_v41 = vpop.f32.mrf.mxu1  ;;  %v841_v45 = vadd.f32 %v840_v40, %v700_v42  ;;  %v2213_v40 = vld [vmem:[%s3072_s8 + $0x8] sm:$0xff] }
 0x222   : > { %v854_v43 = vadd.f32 %v853_v41, %v701_v38  ;;  %1073 = vmatpush.bf16.msrb.mxu1 %v2213_v40  ;;  %v2212_v41 = vld [vmem:[%s3072_s8] sm:$0xff] }
 0x223   : > { %v871_v49 = vpack.c.bf16 %v841_v45, %v841_v45  ;;  %v1018_v45 = vperm.slane %v3142_v39, 1 }
 0x224   : > { %v872_v44 = vpack.c.bf16 %v854_v43, %v854_v43 }
 0x226   : > { %937 = vrot.lane.b32.xlu1 %v872_v44, %s2781_s30  ;;  %v879_v46 = vsel %vm874_vm4, %v872_v44, 0  ;;  %1074 = vmatpush.bf16.msrb.mxu1 %v2212_v41  ;;  %v1992_v41 = vld [vmem:[%s3032_s4] sm:$0xf] }
 0x227   : > { %888 = vmatpush.bf16.xpose.msra.mxu3 %v879_v46 }
 0x228   : > { %v842_v47 = vpop.f32.mrf.mxu0 }
 0x229   : > { %v855_v48 = vpop.f32.mrf.mxu1 }
 0x22c   : > { %v866_v50 = vpop.f32.mrf.mxu2 }
 0x22d   : > { %v867_v54 = vadd.f32 %v866_v50, %v702_v53  ;;  %v2782_v50 = vmov 128.0   ;;  %v2234_v53 = vld [vmem:[%s3032_s4 + $0x74] sm:$0xf] }
 0x22e   : > { %934 = vrot.lane.b32.xlu1 %v871_v49, %s2781_s30  ;;  %1954 = vmatmul.msk.bf16.vlgmr.msra.gmra.mxu3 %vm874_vm4, %v871_v49 }
 0x22f   : > { %v873_v55 = vpack.c.bf16 %v867_v54, %v867_v54 }
 0x231   : > { %v917_v56 = vsel %vm915_vm5, %v873_v55, 0 }
 0x232   : > { %926 = vmatpush.bf16.msrb.mxu3 %v917_v56 }
 0x234   : > { %v868_v51 = vpop.f32.mrf.mxu2 }
 0x235   : > { %v2048_v51 = vld [vmem:[%s3032_s4 + $0x70] sm:$0xf] }
 0x236   : > { %v2049_v54 = vor.u32 %v2235_v52, %v2048_v51 }
 0x238   : > { %1211 = vmatpush.bf16.msrb.mxu2 %v2049_v54 }
 0x298   : > { %v938_v57 = vpop.permute.xlu1 %937 }
 0x299   : > { %v943_v58 = vsel %vm874_vm4, %v938_v57, 0 }
 0x29a   : > { %952 = vmatpush.bf16.xpose.msra.mxu3 %v943_v58 }
 0x2a0   : > { %v935_v12 = vpop.permute.xlu1 %934 }
 0x2b1   : > { %v890_v60 = vpop.f32.mrf.mxu3 }
 0x2b2   : > { %v894_v61 = vmul.f32 0.125, %v890_v60 }
 0x2b4   : > { %v898_v62 = vadd.f32 %v2427_v59, %v894_v61 }
 0x2b6   : > { %v900_v63 = vsel %vm899_vm6, %v898_v62, -inf }
 0x2b7   : > { %901 = vmax.xlane.f32.xlu0 %v900_v63 }
 0x2b9   : > { %v892_v0 = vpop.f32.mrf.mxu3 }
 0x32a   : > { %v902_v1 = vpop.xlane.xlu0 %901 }
 0x32b   : > { %v903_v2 = vsub.f32 %v898_v62, %v902_v1 }
 0x32d   : > { %v904_v3 = vmul.f32 1.442695, %v903_v2  ;;  %v2040_v2 = vld [vmem:[%s3032_s4 + $0x60] sm:$0xf] }
 0x32f   : > { %2428 = vpow2.f32 %v904_v3  ;;  %v2233_v3 = vld [vmem:[%s3032_s4 + $0x64] sm:$0xf0] }
 0x335   : > { %v2429_v4 = vpop.eup %2428 }
 0x336   : > { %v906_v5 = vsel %vm899_vm6, %v2429_v4, 0.0 }
 0x337   : > { %907 = vadd.xlane.f32.xlu0 %v906_v5  ;;  %v2041_v5 = vor.u32 %v2233_v3, %v2040_v2  ;;  %v2242_v2 = vld [vmem:[%s3038_s19 + $0x30] sm:$0xff] }
 0x338   : > { %v2250_v3 = vld [vmem:[%s3038_s19 + $0x70] sm:$0xff] }
 0x339   : > { %1212 = vmatpush.bf16.msrb.mxu2 %v2041_v5  ;;  %v2240_v5 = vld [vmem:[%s3038_s19 + $0x20] sm:$0xff] }
 0x34b   : > { %973 = vrot.lane.b32.xlu0 %v873_v55, %s2781_s30  ;;  %v2050_v55 = vld [vmem:[%s3032_s4 + $0x78] sm:$0xf0] }
 0x34c   : > { %v2053_v56 = vor.u32 %v2234_v53, %v2050_v55 }
 0x3aa   : > { %v908_v6 = vpop.xlane.xlu0 %907 }
 0x3ab   : > { %2430 = vrcp.f32 %v908_v6  ;;  %v2042_v6 = vld [vmem:[%s3032_s4 + $0x68] sm:$0xf0] }
 0x3b1   : > { %v2431_v7 = vpop.eup %2430 }
 0x3b2   : > { %v910_v8 = vmul.f32 %v2431_v7, %v2429_v4  ;;  %v2232_v4 = vld [vmem:[%s3032_s4 + $0x64] sm:$0xf] }
 0x3b3   : > { %v2045_v7 = vor.u32 %v2232_v4, %v2042_v6  ;;  %v2249_v4 = vld [vmem:[%s3038_s19 + $0x68] sm:$0xff]  ;;  %v2248_v6 = vld [vmem:[%s3038_s19 + $0x60] sm:$0xff] }
 0x3b4   : > { %v911_v9 = vpack.c.bf16 %v910_v8, %v910_v8  ;;  %v2032_v8 = vld [vmem:[%s3032_s4 + $0x50] sm:$0xf] }
 0x3b6   : > { %1955 = vmatmul.msk.bf16.vlgmr.msrb.gmra.mxu3 %vm899_vm6, %v911_v9  ;;  %v2231_v9 = vld [vmem:[%s3032_s4 + $0x54] sm:$0xf0] }
 0x3b7   : > { %1224 = vmatpush.bf16.msrb.mxu3 %v2053_v56 }
 0x3bb   : > { %1225 = vmatpush.bf16.msrb.mxu3 %v2045_v7  ;;  %v2239_v7 = vld [vmem:[%s3038_s19 + $0x18] sm:$0xff] }
 0x3bd   : > { %v974_v10 = vpop.permute.xlu0 %973 }
 0x3be   : > { %v979_v11 = vsel %vm915_vm5, %v974_v10, 0  ;;  %v2230_v10 = vld [vmem:[%s3032_s4 + $0x54] sm:$0xf] }
 0x3bf   : > { %988 = vmatpush.bf16.msrb.mxu0 %v979_v11  ;;  %v2033_v11 = vor.u32 %v2231_v9, %v2032_v8  ;;  %v2247_v8 = vld [vmem:[%s3038_s19 + $0x58] sm:$0xff]  ;;  %v2238_v9 = vld [vmem:[%s3038_s19 + $0x10] sm:$0xff] }
 0x3c1   : > { %1213 = vmatpush.bf16.msrb.mxu2 %v2033_v11  ;;  %v2237_v11 = vld [vmem:[%s3038_s19 + $0x8] sm:$0xff] }
 0x3c6   : > { %1956 = vmatmul.msk.bf16.vlgmr.msra.gmra.mxu3 %vm874_vm4, %v935_v12  ;;  %v2034_v12 = vld [vmem:[%s3032_s4 + $0x58] sm:$0xf0] }
 0x439   : > { %v928_v13 = vpop.f32.mrf.mxu3 }
 0x43a   : > { %932 = vst.msk [vmem:[#allocation3] sm:$0xff] %vm874_vm4, %v928_v13  ;;  %v2037_v13 = vor.u32 %v2230_v10, %v2034_v12  ;;  %v2246_v10 = vld [vmem:[%s3038_s19 + $0x50] sm:$0xff]  ;;  %v2245_v12 = vld [vmem:[%s3038_s19 + $0x48] sm:$0xff] }
 0x43c   : > { %1226 = vmatpush.bf16.msrb.mxu3 %v2037_v13  ;;  %v2236_v13 = vld [vmem:[%s3038_s19] sm:$0xff] }
 0x441   : > { %v930_v14 = vpop.f32.mrf.mxu3 }
 0x442   : > { %v2024_v14 = vld [vmem:[%s3032_s4 + $0x40] sm:$0xf] }
 0x449   : > { %v954_v15 = vpop.f32.mrf.mxu3 }
 0x44a   : > { %v958_v16 = vmul.f32 0.125, %v954_v15  ;;  %v2229_v15 = vld [vmem:[%s3032_s4 + $0x44] sm:$0xf0] }
 0x44c   : > { %v959_v17 = vadd.f32 %v2427_v59, %v958_v16  ;;  %v2228_v16 = vld [vmem:[%s3032_s4 + $0x44] sm:$0xf] }
 0x44e   : > { %v960_v18 = vsel %vm899_vm6, %v959_v17, -inf }
 0x44f   : > { %961 = vmax.xlane.f32.xlu2 %v960_v18  ;;  %v2026_v18 = vld [vmem:[%s3032_s4 + $0x48] sm:$0xf0] }
 0x451   : > { %v956_v19 = vpop.f32.mrf.mxu3 }
 0x452   : > { %v2029_v19 = vor.u32 %v2228_v16, %v2026_v18  ;;  %v1130_v16 = vperm.slane %v3138_v37, 4 }
 0x454   : > { %1227 = vmatpush.bf16.msrb.mxu3 %v2029_v19 }
 0x4c2   : > { %v962_v20 = vpop.xlane.xlu2 %961 }
 0x4c3   : > { %v963_v21 = vsub.f32 %v959_v17, %v962_v20  ;;  %v2025_v17 = vor.u32 %v2229_v15, %v2024_v14  ;;  %v2016_v20 = vld [vmem:[%s3032_s4 + $0x30] sm:$0xf]  ;;  %v2244_v14 = vld [vmem:[%s3038_s19 + $0x40] sm:$0xff]  ;;  %v1129_v15 = vperm.slane %v3142_v39, 4 }
 0x4c5   : > { %v964_v22 = vmul.f32 1.442695, %v963_v21  ;;  %1214 = vmatpush.bf16.msrb.mxu2 %v2025_v17  ;;  %v2227_v21 = vld [vmem:[%s3032_s4 + $0x34] sm:$0xf0] }
 0x4c7   : > { %2432 = vpow2.f32 %v964_v22  ;;  %v2226_v22 = vld [vmem:[%s3032_s4 + $0x34] sm:$0xf] }
 0x4cd   : > { %v2433_v23 = vpop.eup %2432 }
 0x4ce   : > { %v966_v24 = vsel %vm899_vm6, %v2433_v23, 0.0 }
 0x4cf   : > { %967 = vadd.xlane.f32.xlu2 %v966_v24  ;;  %v2018_v24 = vld [vmem:[%s3032_s4 + $0x38] sm:$0xf0] }
 0x542   : > { %v968_v26 = vpop.xlane.xlu2 %967 }
 0x543   : > { %2434 = vrcp.f32 %v968_v26  ;;  %v2021_v26 = vor.u32 %v2226_v22, %v2018_v24 }
 0x544   : > { %2436 = vrcp.f32 %v2782_v50 }
 0x545   : > { %1228 = vmatpush.bf16.msrb.mxu3 %v2021_v26 }
 0x549   : > { %v2435_v27 = vpop.eup %2434 }
 0x54a   : > { %v970_v28 = vmul.f32 %v2435_v27, %v2433_v23  ;;  %v2437_v57 = vpop.eup %2436  ;;  %v2017_v23 = vor.u32 %v2227_v21, %v2016_v20  ;;  %v2008_v27 = vld [vmem:[%s3032_s4 + $0x20] sm:$0xf] }
 0x54b   : > { %v1084_v58 = vmul.f32 128.0, %v2437_v57  ;;  %vm1088_vm8 = vweird.f32 %v2437_v57 }
 0x54c   : > { %v971_v29 = vpack.c.bf16 %v970_v28, %v970_v28  ;;  %1215 = vmatpush.bf16.msrb.mxu2 %v2017_v23  ;;  %v2225_v28 = vld [vmem:[%s3032_s4 + $0x24] sm:$0xf0] }
 0x54d   : > { %v1085_v59 = vsub.f32 1.0, %v1084_v58  ;;  %v2009_v30 = vor.u32 %v2225_v28, %v2008_v27  ;;  %v1108_v58 = vperm.slane %v3142_v39, 2 }
 0x54e   : > { %1957 = vmatmul.msk.bf16.vlgmr.msrb.gmra.mxu0 %vm899_vm6, %v971_v29  ;;  %v2224_v29 = vld [vmem:[%s3032_s4 + $0x24] sm:$0xf] }
 0x54f   : > { %v2013_v32 = vor.u32 %v2224_v29, %v2010_v31 }
 0x550   : > { %1216 = vmatpush.bf16.msrb.mxu2 %v2009_v30 }
 0x551   : > { %1229 = vmatpush.bf16.msrb.mxu3 %v2013_v32 }
 0x5cb   : > { %v990_v36 = vpop.f32.mrf.mxu0 }
 0x5cc   : > { %995 = vrot.lane.b32.xlu1 %v990_v36, %s2781_s30  ;;  %v2001_v36 = vor.u32 %v2223_v34, %v2000_v33 }
 0x5ce   : > { %1217 = vmatpush.bf16.msrb.mxu2 %v2001_v36 }
 0x5d3   : > { %v992_v38 = vpop.f32.mrf.mxu0 }
 0x5d4   : > { %v2002_v38 = vld [vmem:[%s3032_s4 + $0x18] sm:$0xf0] }
 0x5d5   : > { %v2005_v40 = vor.u32 %v2222_v35, %v2002_v38 }
 0x5d7   : > { %1230 = vmatpush.bf16.msrb.mxu3 %v2005_v40 }
 0x63e   : > { %v996_v42 = vpop.permute.xlu1 %995 }
 0x63f   : > { %999 = vst.msk [vmem:[#allocation3] sm:$0xff] %vm998_vm7, %v996_v42  ;;  %v2221_v42 = vld [vmem:[%s3032_s4 + $0x4] sm:$0xf0] }
 0x646   : > { %v1000_v43 = vld [vmem:[#allocation3] sm:$0xff] }
 0x647   : > { %v1017_v44 = vpack.c.bf16 %v1000_v43, %v1000_v43  ;;  %v2220_v43 = vld [vmem:[%s3032_s4 + $0x4] sm:$0xf] }
 0x649   : > { %1075 = vmatmul.bf16.vlgmr.msrb.gmra.mxu1 %v1017_v44  ;;  %v1993_v44 = vor.u32 %v2221_v42, %v1992_v41 }
 0x64b   : > { %1218 = vmatpush.bf16.msrb.mxu2 %v1993_v44 }
 0x6c6   : > { %v1076_v46 = vpop.f32.mrf.mxu1 }
 0x6c7   : > { %v1077_v47 = vadd.f32 %v1076_v46, %v1018_v45  ;;  %v1994_v45 = vld [vmem:[%s3032_s4 + $0x8] sm:$0xf0]  ;;  %s3390_s4 = sld [smem:[#allocation25_spill]] }
 0x6c8   : > { %v1997_v46 = vor.u32 %v2220_v43, %v1994_v45  ;;  %v1289_v45 = vperm.slane %v3142_v39, 5 }
 0x6c9   : > { %v1080_v48 = vadd.f32 %v1077_v47, %v3127_v25  ;;  %v1086_v25 = vmul.f32 %v2437_v57, %v1085_v59  ;;  %v2243_v47 = vld [vmem:[%s3038_s19 + $0x38] sm:$0xff] }
 0x6ca   : > { %1231 = vmatpush.bf16.msrb.mxu3 %v1997_v46  ;;  %1386 = vmatpush.bf16.msra.mxu0 %v2243_v47 }
 0x6cb   : > { %1081 = vadd.xlane.f32.xlu2 %v1080_v48  ;;  %v1087_v60 = vadd.f32 %v2437_v57, %v1086_v25 }
 0x6cd   : > { %v3182_v61 = vsel %vm1088_vm8, %v2437_v57, %v1087_v60  ;;  %v1110_v60 = vperm.slane %v3142_v39, 3  ;;  %p2118_p5 = scmp.ne.s32.totalorder %s3390_s4, 1 }
 0x6ce   : > { %v1078_v49 = vpop.f32.mrf.mxu1  ;;  %1387 = vmatpush.bf16.msra.mxu0 %v2242_v2  ;;  %s3391_s24 = sld [smem:[#allocation42_spill]] (!%p2118_p5) }
 0x6d4   : > { %s3392_s28 = smov (!%p2118_p5), %s3391_s24 }
 0x73e   : > { %v1082_v62 = vpop.xlane.xlu2 %1081 }
 0x73f   : > { %v1090_v63 = vmul.f32 %v3182_v61, %v1082_v62 }
 0x741   : > { %v3185_v0 = vsub.f32 %v1080_v48, %v1090_v63  ;;  %v2251_v48 = vld [vmem:[%s3038_s19 + $0x78] sm:$0xff] }
 0x742   : > { %1399 = vmatpush.bf16.msra.mxu1 %v2251_v48 }
 0x743   : > { %v1092_v1 = vmul.f32 %v3185_v0, %v3185_v0 }
 0x745   : > { %1093 = vadd.xlane.f32.xlu1 %v1092_v1 }
 0x746   : > { %1400 = vmatpush.bf16.msra.mxu1 %v2250_v3  ;;  %v1433_v3 = vperm.slane %v3142_v39, 6 }
 0x74a   : > { %1401 = vmatpush.bf16.msra.mxu1 %v2249_v4  ;;  %v1435_v4 = vperm.slane %v3142_v39, 7 }
 0x74e   : > { %1402 = vmatpush.bf16.msra.mxu1 %v2248_v6 }
 0x752   : > { %1403 = vmatpush.bf16.msra.mxu1 %v2247_v8 }
 0x756   : > { %1404 = vmatpush.bf16.msra.mxu1 %v2246_v10 }
 0x75a   : > { %1405 = vmatpush.bf16.msra.mxu1 %v2245_v12 }
 0x75e   : > { %1406 = vmatpush.bf16.msra.mxu1 %v2244_v14 }
 0x7b8   : > { %v1094_v49 = vpop.xlane.xlu1 %1093 }
 0x7b9   : > { %v1095_v50 = vmul.f32 %v1094_v49, %v3182_v61 }
 0x7bb   : > { %v1096_v51 = vadd.f32 1e-12, %v1095_v50 }
 0x7bd   : > { %2438 = vrsqrt.f32 %v1096_v51  ;;  %vm1103_vm10 = vweird.f32 %v1096_v51 }
 0x7c3   : > { %v2439_v52 = vpop.eup %2438 }
 0x7c4   : > { %v1098_v53 = vmul.f32 %v2439_v52, %v1096_v51  ;;  %vm1104_vm9 = vweird.f32 %v2439_v52 }
 0x7c5   : > { %vm1105_vm11 = vmor %vm1103_vm10, %vm1104_vm9 }
 0x7c6   : > { %v1099_v54 = vmul.f32 %v2439_v52, %v1098_v53 }
 0x7c8   : > { %v1100_v55 = vmul.f32 0.5, %v1099_v54 }
 0x7ca   : > { %v1101_v56 = vsub.f32 1.5, %v1100_v55 }
 0x7cc   : > { %v1102_v57 = vmul.f32 %v2439_v52, %v1101_v56 }
 0x7ce   : > { %v1106_v59 = vsel %vm1105_vm11, %v2439_v52, %v1102_v57 }
 0x7cf   : > { %v1107_v25 = vmul.f32 %v1106_v59, %v3185_v0  ;;  %v2241_v0 = vld [vmem:[%s3038_s19 + $0x28] sm:$0xff] }
 0x7d0   : > { %1388 = vmatpush.bf16.msra.mxu0 %v2241_v0 }
 0x7d1   : > { %v1109_v62 = vmul.f32 %v1108_v58, %v1107_v25 }
 0x7d3   : > { %v3223_v63 = vadd.f32 %v1110_v60, %v1109_v62 }
 0x7d4   : > { %1389 = vmatpush.bf16.msra.mxu0 %v2240_v5 }
 0x7d5   : > { %v1128_v1 = vpack.c.bf16 %v3223_v63, %v3223_v63 }
 0x7d7   : > { %1219 = vmatmul.bf16.vlgmr.msrb.gmra.mxu2 %v1128_v1  ;;  %1232 = vmatmul.bf16.vlgmr.msrb.gmra.mxu3 %v1128_v1 }
 0x7d8   : > { %1390 = vmatpush.bf16.msra.mxu0 %v2239_v7 }
 0x7dc   : > { %1391 = vmatpush.bf16.msra.mxu0 %v2238_v9 }
 0x7e0   : > { %1392 = vmatpush.bf16.msra.mxu0 %v2237_v11 }
 0x7e4   : > { %1393 = vmatpush.bf16.msra.mxu0 %v2236_v13 }
 0x85a   : > { %v1220_v17 = vpop.f32.mrf.mxu2  ;;  %v1233_v18 = vpop.f32.mrf.mxu3 }
 0x85b   : > { %v1221_v19 = vadd.f32 %v1220_v17, %v1129_v15  ;;  %v1234_v20 = vadd.f32 %v1233_v18, %v1130_v16 }
 0x85d   : > { %v1237_v21 = vmul.f32 %v1221_v19, %v1221_v19  ;;  %v1238_v22 = vmul.f32 %v1234_v20, %v1234_v20 }
 0x85f   : > { %v1239_v23 = vmul.f32 %v1237_v21, %v1221_v19  ;;  %v1240_v24 = vmul.f32 %v1238_v22, %v1234_v20 }
 0x861   : > { %v1241_v26 = vmul.f32 0.044715, %v1239_v23  ;;  %v1242_v27 = vmul.f32 0.044715, %v1240_v24 }
 0x862   : > { %v1222_v28 = vpop.f32.mrf.mxu2  ;;  %v1235_v29 = vpop.f32.mrf.mxu3 }
 0x863   : > { %v1243_v30 = vadd.f32 %v1241_v26, %v1221_v19  ;;  %v1244_v31 = vadd.f32 %v1242_v27, %v1234_v20 }
 0x865   : > { %v1245_v32 = vmul.f32 0.7978846, %v1243_v30  ;;  %v1246_v33 = vmul.f32 0.7978846, %v1244_v31 }
 0x867   : > { %2440 = vtanh.f32 %v1245_v32 }
 0x868   : > { %2442 = vtanh.f32 %v1246_v33 }
 0x86d   : > { %v2441_v34 = vpop.eup %2440 }
 0x86e   : > { %v2443_v37 = vpop.eup %2442  ;;  %v1249_v35 = vadd.f32 1.0, %v2441_v34 }
 0x86f   : > { %v1250_v36 = vadd.f32 1.0, %v2443_v37 }
 0x870   : > { %v1251_v38 = vmul.f32 0.5, %v1249_v35 }
 0x871   : > { %v1252_v40 = vmul.f32 0.5, %v1250_v36 }
 0x872   : > { %v1253_v41 = vmul.f32 %v1251_v38, %v1221_v19 }
 0x873   : > { %v1254_v42 = vmul.f32 %v1252_v40, %v1234_v20 }
 0x874   : > { %v1287_v43 = vpack.c.bf16 %v1253_v41, %v1253_v41 }
 0x875   : > { %v1288_v44 = vpack.c.bf16 %v1254_v42, %v1254_v42 }
 0x876   : > { %1394 = vmatmul.bf16.vlgmr.msra.gmra.mxu0 %v1287_v43 }
 0x877   : > { %1407 = vmatmul.bf16.vlgmr.msra.gmra.mxu1 %v1288_v44 }
 0x8f3   : > { %v1395_v46 = vpop.f32.mrf.mxu0 }
 0x8f4   : > { %v1396_v47 = vadd.f32 %v1395_v46, %v1289_v45  ;;  %v1408_v48 = vpop.f32.mrf.mxu1 }
 0x8f6   : > { %v1409_v49 = vadd.f32 %v1408_v48, %v1396_v47 }
 0x8f8   : > { %v1412_v50 = vadd.f32 %v1409_v49, %v3223_v63 }
 0x8fa   : > { %1413 = vadd.xlane.f32.xlu2 %v1412_v50 }
 0x8fb   : > { %v1397_v51 = vpop.f32.mrf.mxu0 }
 0x8fc   : > { %v1410_v52 = vpop.f32.mrf.mxu1 }
 0x96d   : > { %v1414_v53 = vpop.xlane.xlu2 %1413 }
 0x96e   : > { %v1415_v54 = vmul.f32 %v1414_v53, %v3182_v61 }
 0x970   : > { %v1416_v55 = vsub.f32 %v1412_v50, %v1415_v54 }
 0x972   : > { %v1417_v56 = vmul.f32 %v1416_v55, %v1416_v55 }
 0x974   : > { %1418 = vadd.xlane.f32.xlu2 %v1417_v56 }
 0x9e7   : > { %v1419_v57 = vpop.xlane.xlu2 %1418 }
 0x9e8   : > { %v1420_v58 = vmul.f32 %v1419_v57, %v3182_v61 }
 0x9ea   : > { %v1421_v59 = vadd.f32 1e-12, %v1420_v58 }
 0x9ec   : > { %2444 = vrsqrt.f32 %v1421_v59  ;;  %vm1428_vm13 = vweird.f32 %v1421_v59 }
 0x9f2   : > { %v2445_v25 = vpop.eup %2444 }
 0x9f3   : > { %v1423_v60 = vmul.f32 %v2445_v25, %v1421_v59  ;;  %vm1429_vm12 = vweird.f32 %v2445_v25 }
 0x9f4   : > { %vm1430_vm14 = vmor %vm1428_vm13, %vm1429_vm12 }
 0x9f5   : > { %v1424_v62 = vmul.f32 %v2445_v25, %v1423_v60 }
 0x9f7   : > { %v1425_v1 = vmul.f32 0.5, %v1424_v62 }
 0x9f9   : > { %v1426_v2 = vsub.f32 1.5, %v1425_v1 }
 0x9fb   : > { %v1427_v63 = vmul.f32 %v2445_v25, %v1426_v2 }
 0x9fd   : > { %v1431_v0 = vsel %vm1430_vm14, %v2445_v25, %v1427_v63 }
 0x9fe   : > { %v1432_v5 = vmul.f32 %v1431_v0, %v1416_v55 }
 0xa00   : > { %v1434_v6 = vmul.f32 %v1433_v3, %v1432_v5  ;;  %1441 = sbr.rel (%p2118_p5) target bundleno = 3127 (0xc37), region = 96 }
 0xa02   : > { %v1436_v7 = vadd.f32 %v1435_v4, %v1434_v6 }
 0xa04   : > { %1437 = vst [vmem:[#allocation2] sm:$0xff] %v1436_v7 }
 0xa05   : > { %v2259_v61 = vld [vmem:[#allocation12 + $0x38] sm:$0xff]  ;;  %v2258_v8 = vld [vmem:[#allocation12 + $0x30] sm:$0xff]  ;;  %v2257_v11 = vld [vmem:[#allocation12 + $0x28] sm:$0xff]  ;;  %v1442_v19 = vpack.c.bf16 %v1436_v7, %v1436_v7  ;;  %vm1601_vm15 = vcmask 1040384  }
 0xa06   : > { %1508 = vmatpush.bf16.msra.mxu0 %v2259_v61  ;;  %v2267_v9 = vld [vmem:[#allocation13 + $0x38] sm:$0xff]  ;;  %v2266_v10 = vld [vmem:[#allocation13 + $0x30] sm:$0xff]  ;;  %v2265_v12 = vld [vmem:[#allocation13 + $0x28] sm:$0xff] }
 0xa07   : > { %1588 = vmatpush.bf16.msra.mxu1 %v2267_v9  ;;  %v2256_v13 = vld [vmem:[#allocation12 + $0x20] sm:$0xff]  ;;  %v2255_v14 = vld [vmem:[#allocation12 + $0x18] sm:$0xff]  ;;  %v2254_v16 = vld [vmem:[#allocation12 + $0x10] sm:$0xff] }
 0xa08   : > { %v2264_v39 = vld [vmem:[#allocation13 + $0x20] sm:$0xff]  ;;  %v2263_v15 = vld [vmem:[#allocation13 + $0x18] sm:$0xff]  ;;  %v2253_v17 = vld [vmem:[#allocation12 + $0x8] sm:$0xff] }
 0xa09   : > { %v2252_v18 = vld [vmem:[#allocation12] sm:$0xff]  ;;  %v2262_v20 = vld [vmem:[#allocation13 + $0x10] sm:$0xff]  ;;  %v2261_v21 = vld [vmem:[#allocation13 + $0x8] sm:$0xff] }
 0xa0a   : > { %1509 = vmatpush.bf16.msra.mxu0 %v2258_v8  ;;  %v2260_v22 = vld [vmem:[#allocation13] sm:$0xff] }
 0xa0b   : > { %1589 = vmatpush.bf16.msra.mxu1 %v2266_v10  ;;  %v1459_v23 = vld [vmem:[%s3391_s24] sm:$0x1]  ;;  %v1539_v30 = vld [vmem:[%s3392_s28 + $0x1] sm:$0x1] }
 0xa0e   : > { %1510 = vmatpush.bf16.msra.mxu0 %v2257_v11 }
 0xa0f   : > { %1590 = vmatpush.bf16.msra.mxu1 %v2265_v12 }
 0xa12   : > { %1511 = vmatpush.bf16.msra.mxu0 %v2256_v13 }
 0xa13   : > { %1591 = vmatpush.bf16.msra.mxu1 %v2264_v39 }
 0xa16   : > { %1512 = vmatpush.bf16.msra.mxu0 %v2255_v14 }
 0xa17   : > { %1592 = vmatpush.bf16.msra.mxu1 %v2263_v15 }
 0xa1a   : > { %1513 = vmatpush.bf16.msra.mxu0 %v2254_v16 }
 0xa1b   : > { %1593 = vmatpush.bf16.msra.mxu1 %v2262_v20 }
 0xa1e   : > { %1514 = vmatpush.bf16.msra.mxu0 %v2253_v17 }
 0xa1f   : > { %1594 = vmatpush.bf16.msra.mxu1 %v2261_v21 }
 0xa22   : > { %1515 = vmatpush.bf16.msra.mxu0 %v2252_v18 }
 0xa23   : > { %1595 = vmatpush.bf16.msra.mxu1 %v2260_v22 }
 0xa25   : > { %1516 = vmatmul.bf16.vlgmr.msra.gmra.mxu0 %v1442_v19 }
 0xaa2   : > { %v1517_v24 = vpop.f32.mrf.mxu0 }
 0xaa3   : > { %v1518_v26 = vadd.f32 %v1517_v24, %v1459_v23 }
 0xaa5   : > { %2446 = vtanh.f32 %v1518_v26 }
 0xaaa   : > { %v1519_v27 = vpop.f32.mrf.mxu0 }
 0xaab   : > { %v2447_v28 = vpop.eup %2446 }
 0xaac   : > { %v1522_v29 = vpack.c.bf16 %v2447_v28, %v2447_v28 }
 0xaae   : > { %1596 = vmatmul.bf16.vlgmr.msra.gmra.mxu1 %v1522_v29 }
 0xb2b   : > { %v1597_v31 = vpop.f32.mrf.mxu1 }
 0xb2c   : > { %v1598_v32 = vadd.f32 %v1597_v31, %v1539_v30 }
 0xb2e   : > { %v1602_v33 = vsel %vm1601_vm15, %v1598_v32, -inf }
 0xb2f   : > { %1603 = vmax.xlane.f32.xlu0 %v1602_v33 }
 0xb33   : > { %v1599_v34 = vpop.f32.mrf.mxu1 }
 0xba2   : > { %v1604_v37 = vpop.xlane.xlu0 %1603 }
 0xba3   : > { %v1605_v35 = vsub.f32 %v1598_v32, %v1604_v37 }
 0xba5   : > { %v1606_v36 = vmul.f32 1.442695, %v1605_v35 }
 0xba7   : > { %2448 = vpow2.f32 %v1606_v36 }
 0xbad   : > { %v2449_v38 = vpop.eup %2448 }
 0xbae   : > { %v1608_v40 = vsel %vm1601_vm15, %v2449_v38, 0.0 }
 0xbaf   : > { %1609 = vadd.xlane.f32.xlu0 %v1608_v40 }
 0xc22   : > { %v1610_v41 = vpop.xlane.xlu0 %1609 }
 0xc23   : > { %2450 = vrcp.f32 %v1610_v41  ;;  %v1622_v45 = vand.u32 2147483648, %v1610_v41  ;;  %v1620_v47 = vand.u32 2147483647, %v1610_v41  ;;  %vm1616_vm1 = vweird.f32 %v1610_v41 }
 0xc25   : > { %v1623_v49 = vor.u32 1.1754944e-38, %v1622_v45  ;;  %vm1621_vm3 = vcmp.eq.f32.partialorder %v1620_v47, 8.507059e+37 }
 0xc29   : > { %v2451_v42 = vpop.eup %2450 }
 0xc2a   : > { %v1612_v43 = vmul.f32 %v2451_v42, %v1610_v41  ;;  %vm1617_vm0 = vweird.f32 %v2451_v42 }
 0xc2b   : > { %vm1618_vm2 = vmor %vm1616_vm1, %vm1617_vm0 }
 0xc2c   : > { %v1613_v44 = vsub.f32 1.0, %v1612_v43 }
 0xc2e   : > { %v1614_v46 = vmul.f32 %v2451_v42, %v1613_v44 }
 0xc30   : > { %v1615_v48 = vadd.f32 %v2451_v42, %v1614_v46 }
 0xc32   : > { %v1619_v50 = vsel %vm1618_vm2, %v2451_v42, %v1615_v48 }
 0xc33   : > { %v1624_v51 = vsel %vm1621_vm3, %v1623_v49, %v1619_v50 }
 0xc34   : > { %v1625_v52 = vmul.f32 %v2449_v38, %v1624_v51 }
 0xc36   : > { %1626 = vst [vmem:[%s3076_s3] sm:$0x1] %v1625_v52 }
 0xc37 PF: > { %s3393_s17 = sld [smem:[#allocation26_spill]]  ;;  %s1638_s8 = sshll.u32 %s3076_s3, 4  ;;  %s1639_s8 = int_to_ptr.vmem [resolvable:$true] %s1638_s8 }
 0xc38   : > { %s3394_s16 = sld [smem:[#allocation43_spill]]  ;;  %s1628_s11 = scalar_lea.sflag [#allocation6], %s609_s12 }
 0xc3e   : > { %s1636_s13 = scalar_lea.hbm %s3394_s16, %s3393_s17  ;;  %s2652_s2 = scalar_lea.hbm %s3394_s16, 2 }
 0xc3f   : > { %s1640_s29 = sshll.u32 %s1636_s13, 4  ;;  %s1641_s29 = int_to_ptr.hbm [resolvable:$true] %s1640_s29 }
 0xc40   : > { %s2646_s23 = sshra.s32 %s1641_s29, 4  ;;  %s2647_s23 = int_to_ptr.hbm [resolvable:$true] %s2646_s23 }
 0xc41   : > { %s2648_s15 = scalar_lea.hbm %s2647_s23, 1  ;;  %p2653_p12 = scmp.lt.s32.totalorder %s2647_s23, %s3394_s16 }
 0xc42   : > { %p2649_p6 = scmp.ne.s32.totalorder %s2647_s23, %s2648_s15  ;;  %p2654_p1 = scmp.lt.s32.totalorder %s2652_s2, %s2648_s15 }
 0xc44   : > { %p2650_p8 = pnand %p2649_p6, %p2914_p7  ;;  %p2655_p11 = por %p2654_p1, %p2653_p12 }
 0xc46   : > { %p2651_p10 = pneg %p2650_p8 }
 0xc48   : > { %p2656_p13 = pnand %p2655_p11, %p2651_p10 }
 0xc4a   : > { %2659 = shalt.err (!%p2656_p13)
}
 0xc4b   : > { %2290 = dma.vmem_to_hbm [thread:$0]  (%p2914_p7), %s1639_s8, 16, %s1641_s29, %s1628_s11  }
 0xc4c PF: > { %s3396_s12 = sld [smem:[#allocation22_spill]]  ;;  %p2321_p0 = scmp.ge.s32.totalorder %s2770_s27, 2 }
 0xc4e   : > { %p2313_p3 = pnand %p2321_p0, %p2919_p9 }
 0xc50   : > { %p2314_p2 = pneg %p2313_p3 }
 0xc52   : > { %s1652_s19 = sand.u32 1, %s3396_s12  }
 0xc53   : > { %s1653_s0 = scalar_lea.sflag [#allocation6], %s1652_s19 }
 0xc54   : > { %2725 = dma.done.wait (%p2314_p2), %s1653_s0, 16  }
 0xc55   : > { %2727 = vsyncadd (%p2314_p2), %s1653_s0, 4294967280  ;;  %s34_s27 = sadd.s32 1, %s2770_s27   ;;  %s3398_s24 = sld [smem:[#allocation23_spill]] }
 0xc56   : > { %p31_p4 = scmp.ge.s32.totalorder %s34_s27, 6   ;;  %s3399_s19 = sld [smem:[#allocation33_spill]] }
 0xc57   : > { %s3400_s14 = sld [smem:[#allocation24_spill]]  ;;  %s3405_s17 = smov %s2734_s18 }
 0xc58   : > { %s3401_s22 = sld [smem:[#allocation32_spill]]  ;;  %s3407_s20 = smov %s2746_s21 }
 0xc59   : > { %s3402_s5 = sld [smem:[#allocation27_spill]]  ;;  %s3409_s23 = smov %s2762_s25 }
 0xc5a   : > { %s3403_s10 = sld [smem:[#allocation30_spill]] }
 0xc5b   : > { %s3404_s26 = sld [smem:[#allocation31_spill]]  ;;  %s3406_s18 = smov %s3398_s24 }
 0xc5c   :  { %33 = sbr.rel (!%p31_p4) target bundleno = 25 (0x19), region = 171 }
 0xc5d   : > { %s3408_s21 = smov %s3400_s14 }
 0xc5f   : > { %s3410_s24 = smov %s3402_s5 }
 0xc60   : > { %s3411_s25 = smov %s3403_s10 }
 0xc61   :  { %1658 = vsyncpa [#allocation5], 1 }
 0xc62   :  { %1660 = vsyncpa [#allocation5 + $0x1], 1 }
 0xc63   :  { %1661 = vsyncpa [#allocation8], 1 }
 0xc64   :  { %1663 = vsyncpa [#allocation8 + $0x1], 1 }
 0xc65   :  { %1664 = vsyncpa [#allocation11], 1 }
 0xc66   :  { %1666 = vsyncpa [#allocation11 + $0x1], 1 }
 0xc67   :  { %1667 = vsyncpa [#allocation14], 1 }
 0xc68   :  { %1668 = vsyncpa [#allocation6], 1 }
 0xc69   :  { %1670 = vsyncpa [#allocation6 + $0x1], 1 }

</bundles_post_ra>
